<compile_context>
chip_gen: v7x
topology: tpu7x:2x2x1
jax: 0.10.0
libtpu: 0.0.40
codegen_flags: <defaults>
</compile_context>

<pallas_src>
import functools

import jax
import jax.numpy as jnp
from jax import lax
from jax.experimental import pallas as pl
from jax.experimental.pallas import tpu as pltpu


def _round_up(x, m):
    return (x + m - 1) // m * m


def _lstm_chunk_kernel(x_ref, lens_ref, w_ih_ref, w_hh_ref, b_ref, out_ref,
                       gx_sc, h_sc, c_sc, *, t_chunk, hidden_pad, unroll):
    """One grid step == t_chunk timesteps of the recurrence for one batch tile.

    x_ref   : (tc, bt, D)    f32  time-major input slab
    lens_ref: (bt, 1)        i32  per-row sequence lengths
    w_ih_ref: (D, 4*Hp)      bf16 input->gates weights (pre-transposed, gate-aligned)
    w_hh_ref: (Hp, 4*Hp)     bf16 hidden->gates weights (pre-transposed, gate-aligned)
    b_ref   : (1, 4*Hp)      f32  combined bias (gate-aligned)
    out_ref : (tc, bt, Hp)   f32  hidden-state outputs
    gx_sc   : (tc, bt, 4*Hp) f32  per-chunk input-gate projections (scratch)
    h_sc/c_sc: (bt, Hp)      f32  carried recurrent state (scratch)
    """
    t_idx = pl.program_id(1)
    tc = t_chunk
    hp = hidden_pad
    bt, _ = h_sc.shape
    d = x_ref.shape[-1]

    # New batch tile -> reset the carried state.
    @pl.when(t_idx == 0)
    def _():
        h_sc[...] = jnp.zeros_like(h_sc)
        c_sc[...] = jnp.zeros_like(c_sc)

    # Fused input projection for the whole chunk: ONE MXU matmul (bf16 operands,
    # f32 accumulation), hoisted out of the serial recurrence.
    x2d = x_ref[...].reshape(tc * bt, d).astype(jnp.bfloat16)
    gx = jnp.dot(x2d, w_ih_ref[...], preferred_element_type=jnp.float32)
    gx_sc[...] = (gx + b_ref[...]).reshape(tc, bt, 4 * hp)

    lens_vec = lens_ref[...]                       # (bt, 1) i32, hoisted
    t0 = t_idx * tc

    def step(i, carry):
        h, c = carry
        # Recurrent projection on the MXU: bf16 operands, f32 accumulation.
        gates = gx_sc[i] + jnp.dot(h.astype(jnp.bfloat16), w_hh_ref[...],
                                   preferred_element_type=jnp.float32)
        i_g = jax.nn.sigmoid(gates[:, 0 * hp:1 * hp])
        f_g = jax.nn.sigmoid(gates[:, 1 * hp:2 * hp])
        g_g = jnp.tanh(gates[:, 2 * hp:3 * hp])
        o_g = jax.nn.sigmoid(gates[:, 3 * hp:4 * hp])
        c_new = f_g * c + i_g * g_g
        h_new = o_g * jnp.tanh(c_new)
        # pack_padded_sequence semantics: freeze state past the sequence end,
        # zero the padded output positions.
        valid = (t0 + i) < lens_vec                # (bt, 1) bool
        c = jnp.where(valid, c_new, c)
        h = jnp.where(valid, h_new, h)
        out_ref[i] = jnp.where(valid, h_new, 0.0).astype(out_ref.dtype)
        return h, c

    h, c = lax.fori_loop(0, tc, step, (h_sc[...], c_sc[...]), unroll=unroll)
    h_sc[...] = h
    c_sc[...] = c


def init_lstm_params(key, input_size, hidden_size):
    """Deterministic synthetic LSTM parameters (PyTorch gate order i,f,g,o)."""
    k1, k2, k3, k4 = jax.random.split(key, 4)
    bound = 1.0 / jnp.sqrt(hidden_size)
    w_ih = jax.random.uniform(k1, (4 * hidden_size, input_size),
                              jnp.float32, -bound, bound)
    w_hh = jax.random.uniform(k2, (4 * hidden_size, hidden_size),
                              jnp.float32, -bound, bound)
    b_ih = jax.random.uniform(k3, (4 * hidden_size,), jnp.float32, -bound, bound)
    b_hh = jax.random.uniform(k4, (4 * hidden_size,), jnp.float32, -bound, bound)
    return dict(w_ih=w_ih, w_hh=w_hh, b_ih=b_ih, b_hh=b_hh)


def seq2seq_encoder_pallas(sequences_batch, sequences_lengths, params,
                           *, t_chunk=64, max_length=None):
    """sequences_batch: (B, T, D) f32, sequences_lengths: (B,) int32.

    Returns (B, max_length, H) batch-first outputs (zeros at padded steps).
    max_length must be static; if None, the full (padded) T is returned.
    """
    B, T, D = sequences_batch.shape
    H = params["w_hh"].shape[1]
    if max_length is None:
        # TODO(synk): the original module trims to max(lengths) (data-dependent
        # shape, would force a host sync); pass max_length statically instead.
        max_length = T

    Hp = _round_up(H, 128)            # lane-aligned hidden size
    Bp = _round_up(max(B, 8), 8)      # sublane-aligned batch

    # ---- Batch tile: capped at 64 (vreg pressure) and preferring >= 2 tiles
    # so the "parallel" axis can shard across v7x's two TensorCores. ----------
    bt = None
    for cand in (64, 32, 16, 8):
        if Bp % cand == 0 and Bp // cand >= 2:
            bt = cand
            break
    if bt is None:
        bt = min(Bp, 64)

    # ---- Time chunk: as large as the VMEM budget allows (amortizes per-grid-
    # step overhead); budget ~40 MiB keeps v7x (64 MiB VMEM) safe. ------------
    tc = max(1, min(t_chunk, T))

    def _vmem_estimate(tc_, bt_):
        lane = lambda n: _round_up(n, 128)
        x_blk = 2 * tc_ * bt_ * lane(D) * 4          # double-buffered input
        o_blk = 2 * tc_ * bt_ * Hp * 4               # double-buffered output
        gx = tc_ * bt_ * 4 * Hp * 4                  # gates scratch
        w = 2 * (D * 4 * Hp + Hp * 4 * Hp) * 2       # bf16 weights (2 bufs)
        misc = 2 * bt_ * Hp * 4 + 2 * bt_ * 128 * 4 + 2 * 4 * Hp * 4
        return x_blk + o_blk + gx + w + misc

    budget = 40 * 1024 * 1024
    while tc > 8 and _vmem_estimate(tc, bt) > budget:
        tc = max(8, tc // 2)
    tc = min(tc, T) if T >= 1 else 1
    Tp = _round_up(T, tc)
    unroll = min(8, tc)

    # ---- Weight prep: transpose and scatter each PyTorch gate block (i,f,g,o)
    # into its own 128-aligned Hp segment of the 4*Hp gate axis. --------------
    w_ih = params["w_ih"].astype(jnp.float32)                       # (4H, D)
    w_hh = params["w_hh"].astype(jnp.float32)                       # (4H, H)
    bias = (params["b_ih"] + params["b_hh"]).astype(jnp.float32)    # (4H,)

    w_ih_t = jnp.zeros((D, 4 * Hp), jnp.float32)
    w_hh_t = jnp.zeros((Hp, 4 * Hp), jnp.float32)
    b_pad = jnp.zeros((1, 4 * Hp), jnp.float32)
    for k in range(4):
        w_ih_t = w_ih_t.at[:, k * Hp:k * Hp + H].set(w_ih[k * H:(k + 1) * H, :].T)
        w_hh_t = w_hh_t.at[:H, k * Hp:k * Hp + H].set(w_hh[k * H:(k + 1) * H, :].T)
        b_pad = b_pad.at[0, k * Hp:k * Hp + H].set(bias[k * H:(k + 1) * H])
    w_ih_bf16 = w_ih_t.astype(jnp.bfloat16)   # MXU operands; accumulation is f32
    w_hh_bf16 = w_hh_t.astype(jnp.bfloat16)

    # ---- Input prep: time-major + pad (small: D-wide, not 4*Hp-wide). -------
    x_tm = jnp.transpose(sequences_batch.astype(jnp.float32), (1, 0, 2))
    x_tm = jnp.pad(x_tm, ((0, Tp - T), (0, Bp - B), (0, 0)))        # (Tp,Bp,D)

    # Per-row lengths (padded batch rows get length 0 -> state/output stay 0).
    lens2d = jnp.zeros((Bp, 1), jnp.int32).at[:B, 0].set(
        sequences_lengths.astype(jnp.int32))

    kernel = functools.partial(_lstm_chunk_kernel, t_chunk=tc, hidden_pad=Hp,
                               unroll=unroll)

    out_tm = pl.pallas_call(
        kernel,
        out_shape=jax.ShapeDtypeStruct((Tp, Bp, Hp), jnp.float32),
        grid_spec=pltpu.PrefetchScalarGridSpec(
            num_scalar_prefetch=0,
            grid=(Bp // bt, Tp // tc),               # (batch tiles, time chunks)
            in_specs=[
                pl.BlockSpec((tc, bt, D), lambda b, t: (t, b, 0)),        # x
                pl.BlockSpec((bt, 1), lambda b, t: (b, 0)),               # lengths
                pl.BlockSpec((D, 4 * Hp), lambda b, t: (0, 0)),           # W_ih^T
                pl.BlockSpec((Hp, 4 * Hp), lambda b, t: (0, 0)),          # W_hh^T
                pl.BlockSpec((1, 4 * Hp), lambda b, t: (0, 0)),           # bias
            ],
            out_specs=pl.BlockSpec((tc, bt, Hp), lambda b, t: (t, b, 0)),
            scratch_shapes=[
                pltpu.VMEM((tc, bt, 4 * Hp), jnp.float32),   # per-chunk gx
                pltpu.VMEM((bt, Hp), jnp.float32),           # h carry
                pltpu.VMEM((bt, Hp), jnp.float32),           # c carry
            ],
        ),
        compiler_params=pltpu.CompilerParams(
            dimension_semantics=("parallel", "arbitrary"),
            vmem_limit_bytes=48 * 1024 * 1024,
        ),
    )(x_tm, lens2d, w_ih_bf16, w_hh_bf16, b_pad)

    out = out_tm[:max_length, :B, :H]
    return jnp.transpose(out, (1, 0, 2))                            # (B,max_len,H)


def seq2seq_encoder_ref(sequences_batch, sequences_lengths, params,
                        *, max_length=None):
    """Pure-JAX reference (lax.scan LSTM with masking).

    Mirrors the kernel's precision choice: both matmuls use bf16 operands with
    f32 accumulation; everything else is f32.
    """
    B, T, D = sequences_batch.shape
    H = params["w_hh"].shape[1]
    if max_length is None:
        max_length = T
    x = jnp.transpose(sequences_batch.astype(jnp.float32), (1, 0, 2))
    w_ih_t = params["w_ih"].T.astype(jnp.bfloat16)
    w_hh_t = params["w_hh"].T.astype(jnp.bfloat16)
    bias = (params["b_ih"] + params["b_hh"]).astype(jnp.float32)
    lens = sequences_lengths.astype(jnp.int32)

    def step(carry, inp):
        h, c = carry
        x_t, t = inp
        gates = (jnp.dot(x_t.astype(jnp.bfloat16), w_ih_t,
                         preferred_element_type=jnp.float32)
                 + bias
                 + jnp.dot(h.astype(jnp.bfloat16), w_hh_t,
                           preferred_element_type=jnp.float32))
        i = jax.nn.sigmoid(gates[:, 0 * H:1 * H])
        f = jax.nn.sigmoid(gates[:, 1 * H:2 * H])
        g = jnp.tanh(gates[:, 2 * H:3 * H])
        o = jax.nn.sigmoid(gates[:, 3 * H:4 * H])
        c_new = f * c + i * g
        h_new = o * jnp.tanh(c_new)
        valid = (t < lens)[:, None]
        c = jnp.where(valid, c_new, c)
        h = jnp.where(valid, h_new, h)
        return (h, c), jnp.where(valid, h_new, 0.0)

    init = (jnp.zeros((B, H), jnp.float32), jnp.zeros((B, H), jnp.float32))
    _, outs = lax.scan(step, init, (x, jnp.arange(T)))
    return jnp.transpose(outs, (1, 0, 2))[:, :max_length, :]


if __name__ == "__main__":
    key = jax.random.PRNGKey(0)
    k_x, k_p = jax.random.split(key)

    B, T, D, H = 4, 8, 16, 32
    x = jax.random.normal(k_x, (B, T, D), jnp.float32)
    lengths = jnp.array([8, 5, 3, 8], dtype=jnp.int32)   # max(lengths) == T

    params = init_lstm_params(k_p, D, H)

    out = seq2seq_encoder_pallas(x, lengths, params)     # max_length=None -> T
    out = jax.block_until_ready(out)

    ref = seq2seq_encoder_ref(x, lengths, params)
    assert out.shape == (B, T, H), out.shape
    assert jnp.allclose(out, ref, atol=2e-3, rtol=2e-3), "mismatch vs reference"

    print("KERNEL_OK")
</pallas_src>

<mosaic_0001>
module attributes {stable_mosaic.version = 11 : i64} {
  func.func @_lstm_chunk_kernel(%arg0: i32, %arg1: i32, %arg2: memref<8x8x16xf32, #tpu.memory_space<vmem>>, %arg3: memref<8x1xi32, #tpu.memory_space<vmem>>, %arg4: memref<16x512xbf16, #tpu.memory_space<vmem>>, %arg5: memref<128x512xbf16, #tpu.memory_space<vmem>>, %arg6: memref<1x512xf32, #tpu.memory_space<vmem>>, %arg7: memref<8x8x128xf32, #tpu.memory_space<vmem>>, %arg8: memref<8x8x512xf32, #tpu.memory_space<vmem>>, %arg9: memref<8x128xf32, #tpu.memory_space<vmem>>, %arg10: memref<8x128xf32, #tpu.memory_space<vmem>>) attributes {dimension_semantics = [#tpu.dimension_semantics<parallel>, #tpu.dimension_semantics<arbitrary>], iteration_bounds = array<i64: 1, 1>, scalar_prefetch = 0 : i64, scratch_operands = 3 : i64, tpu.core_type = #tpu.core_type<tc>, window_params = [{transform_indices = @transform_0, window_bounds = array<i64: 8, 8, 16>}, {transform_indices = @transform_1, window_bounds = array<i64: 8, 1>}, {pipeline_mode = #tpu.pipeline_mode<synchronous>, transform_indices = @transform_2, window_bounds = array<i64: 16, 512>}, {pipeline_mode = #tpu.pipeline_mode<synchronous>, transform_indices = @transform_3, window_bounds = array<i64: 128, 512>}, {pipeline_mode = #tpu.pipeline_mode<synchronous>, transform_indices = @transform_4, window_bounds = array<i64: 1, 512>}, {transform_indices = @transform_5, window_bounds = array<i64: 8, 8, 128>}]} {
    %c0_i32 = arith.constant 0 : i32
    %0 = arith.cmpi eq, %arg1, %c0_i32 : i32
    %1 = arith.extui %0 : i1 to i32
    %c0_i32_0 = arith.constant 0 : i32
    %2 = arith.cmpi ne, %1, %c0_i32_0 : i32
    scf.if %2 {
      %cst_110 = arith.constant 0.000000e+00 : f32
      %411 = vector.broadcast %cst_110 : f32 to vector<8x128xf32>
      %c0_111 = arith.constant 0 : index
      %c0_112 = arith.constant 0 : index
      %412 = vector.load %arg9[%c0_111, %c0_112] : memref<8x128xf32, #tpu.memory_space<vmem>>, vector<8x128xf32>
      tpu.vector_store %arg9[%c0_111, %c0_112], %411 {strides = array<i32>} : memref<8x128xf32, #tpu.memory_space<vmem>>, vector<8x128xf32>,
      %cst_113 = arith.constant 0.000000e+00 : f32
      %413 = vector.broadcast %cst_113 : f32 to vector<8x128xf32>
      %c0_114 = arith.constant 0 : index
      %c0_115 = arith.constant 0 : index
      %414 = vector.load %arg10[%c0_114, %c0_115] : memref<8x128xf32, #tpu.memory_space<vmem>>, vector<8x128xf32>
      tpu.vector_store %arg10[%c0_114, %c0_115], %413 {strides = array<i32>} : memref<8x128xf32, #tpu.memory_space<vmem>>, vector<8x128xf32>,
    } else {
    }
    %c0 = arith.constant 0 : index
    %c0_1 = arith.constant 0 : index
    %c0_2 = arith.constant 0 : index
    %3 = vector.load %arg2[%c0, %c0_1, %c0_2] : memref<8x8x16xf32, #tpu.memory_space<vmem>>, vector<8x8x16xf32>
    %4 = vector.shape_cast %3 : vector<8x8x16xf32> to vector<64x16xf32>
    %5 = arith.truncf %4 : vector<64x16xf32> to vector<64x16xbf16>
    %c0_3 = arith.constant 0 : index
    %c0_4 = arith.constant 0 : index
    %6 = vector.load %arg4[%c0_3, %c0_4] : memref<16x512xbf16, #tpu.memory_space<vmem>>, vector<16x512xbf16>
    %cst = arith.constant dense<0.000000e+00> : vector<64x512xf32>
    %7 = tpu.matmul %5, %6, %cst {dimension_numbers = #tpu.dot_dimension_numbers<[1], [0], [0], [1], [0, 0, 1, 1], [], []>} : vector<64x16xbf16>, vector<16x512xbf16>, vector<64x512xf32> -> vector<64x512xf32>
    %c0_5 = arith.constant 0 : index
    %c0_6 = arith.constant 0 : index
    %8 = vector.load %arg6[%c0_5, %c0_6] : memref<1x512xf32, #tpu.memory_space<vmem>>, vector<1x512xf32>
    %9 = vector.broadcast %8 : vector<1x512xf32> to vector<64x512xf32>
    %10 = arith.addf %7, %9 : vector<64x512xf32>
    %11 = vector.shape_cast %10 : vector<64x512xf32> to vector<8x8x512xf32>
    %c0_7 = arith.constant 0 : index
    %c0_8 = arith.constant 0 : index
    %c0_9 = arith.constant 0 : index
    %12 = vector.load %arg8[%c0_7, %c0_8, %c0_9] : memref<8x8x512xf32, #tpu.memory_space<vmem>>, vector<8x8x512xf32>
    tpu.vector_store %arg8[%c0_7, %c0_8, %c0_9], %11 {strides = array<i32>} : memref<8x8x512xf32, #tpu.memory_space<vmem>>, vector<8x8x512xf32>,
    %c0_10 = arith.constant 0 : index
    %c0_11 = arith.constant 0 : index
    %13 = vector.load %arg3[%c0_10, %c0_11] : memref<8x1xi32, #tpu.memory_space<vmem>>, vector<8x1xi32>
    %c8_i32 = arith.constant 8 : i32
    %14 = arith.muli %arg1, %c8_i32 : i32
    %c0_12 = arith.constant 0 : index
    %c0_13 = arith.constant 0 : index
    %15 = vector.load %arg9[%c0_12, %c0_13] : memref<8x128xf32, #tpu.memory_space<vmem>>, vector<8x128xf32>
    %c0_14 = arith.constant 0 : index
    %c0_15 = arith.constant 0 : index
    %16 = vector.load %arg10[%c0_14, %c0_15] : memref<8x128xf32, #tpu.memory_space<vmem>>, vector<8x128xf32>
    %c0_i32_16 = arith.constant 0 : i32
    %17 = arith.index_cast %c0_i32_16 : i32 to index
    %c0_17 = arith.constant 0 : index
    %c0_18 = arith.constant 0 : index
    %18 = vector.load %arg8[%17, %c0_17, %c0_18] : memref<8x8x512xf32, #tpu.memory_space<vmem>>, vector<1x8x512xf32>
    %19 = vector.shape_cast %18 : vector<1x8x512xf32> to vector<8x512xf32>
    %20 = arith.truncf %15 : vector<8x128xf32> to vector<8x128xbf16>
    %c0_19 = arith.constant 0 : index
    %c0_20 = arith.constant 0 : index
    %21 = vector.load %arg5[%c0_19, %c0_20] : memref<128x512xbf16, #tpu.memory_space<vmem>>, vector<128x512xbf16>
    %cst_21 = arith.constant dense<0.000000e+00> : vector<8x512xf32>
    %22 = tpu.matmul %20, %21, %cst_21 {dimension_numbers = #tpu.dot_dimension_numbers<[1], [0], [0], [1], [0, 0, 1, 1], [], []>} : vector<8x128xbf16>, vector<128x512xbf16>, vector<8x512xf32> -> vector<8x512xf32>
    %23 = arith.addf %19, %22 : vector<8x512xf32>
    %24 = vector.extract_strided_slice %23 {offsets = [0, 0], sizes = [8, 128], strides = [1, 1]} : vector<8x512xf32> to vector<8x128xf32>
    %25 = arith.negf %24 : vector<8x128xf32>
    %26 = math.exp %25 : vector<8x128xf32>
    %cst_22 = arith.constant 1.000000e+00 : f32
    %27 = vector.broadcast %cst_22 : f32 to vector<8x128xf32>
    %28 = arith.addf %27, %26 : vector<8x128xf32>
    %29 = arith.divf %27, %28 : vector<8x128xf32>
    %30 = vector.extract_strided_slice %23 {offsets = [0, 128], sizes = [8, 128], strides = [1, 1]} : vector<8x512xf32> to vector<8x128xf32>
    %31 = arith.negf %30 : vector<8x128xf32>
    %32 = math.exp %31 : vector<8x128xf32>
    %cst_23 = arith.constant 1.000000e+00 : f32
    %33 = vector.broadcast %cst_23 : f32 to vector<8x128xf32>
    %34 = arith.addf %33, %32 : vector<8x128xf32>
    %35 = arith.divf %33, %34 : vector<8x128xf32>
    %36 = vector.extract_strided_slice %23 {offsets = [0, 256], sizes = [8, 128], strides = [1, 1]} : vector<8x512xf32> to vector<8x128xf32>
    %37 = math.tanh %36 : vector<8x128xf32>
    %38 = vector.extract_strided_slice %23 {offsets = [0, 384], sizes = [8, 128], strides = [1, 1]} : vector<8x512xf32> to vector<8x128xf32>
    %39 = arith.negf %38 : vector<8x128xf32>
    %40 = math.exp %39 : vector<8x128xf32>
    %cst_24 = arith.constant 1.000000e+00 : f32
    %41 = vector.broadcast %cst_24 : f32 to vector<8x128xf32>
    %42 = arith.addf %41, %40 : vector<8x128xf32>
    %43 = arith.divf %41, %42 : vector<8x128xf32>
    %44 = arith.mulf %35, %16 : vector<8x128xf32>
    %45 = arith.mulf %29, %37 : vector<8x128xf32>
    %46 = arith.addf %44, %45 : vector<8x128xf32>
    %47 = math.tanh %46 : vector<8x128xf32>
    %48 = arith.mulf %43, %47 : vector<8x128xf32>
    %49 = arith.addi %14, %c0_i32_16 : i32
    %50 = vector.broadcast %49 : i32 to vector<8x1xi32>
    %51 = arith.cmpi slt, %50, %13 : vector<8x1xi32>
    %52 = vector.shape_cast %51 : vector<8x1xi1> to vector<8x1xi1>
    %53 = vector.broadcast %52 : vector<8x1xi1> to vector<8x128xi1>
    %54 = arith.select %53, %46, %16 : vector<8x128xi1>, vector<8x128xf32>
    %55 = vector.shape_cast %51 : vector<8x1xi1> to vector<8x1xi1>
    %56 = vector.broadcast %55 : vector<8x1xi1> to vector<8x128xi1>
    %57 = arith.select %56, %48, %15 : vector<8x128xi1>, vector<8x128xf32>
    %cst_25 = arith.constant 0.000000e+00 : f32
    %58 = vector.shape_cast %51 : vector<8x1xi1> to vector<8x1xi1>
    %59 = vector.broadcast %58 : vector<8x1xi1> to vector<8x128xi1>
    %60 = vector.broadcast %cst_25 : f32 to vector<8x128xf32>
    %61 = arith.select %59, %48, %60 : vector<8x128xi1>, vector<8x128xf32>
    %62 = arith.index_cast %c0_i32_16 : i32 to index
    %c0_26 = arith.constant 0 : index
    %c0_27 = arith.constant 0 : index
    %63 = vector.load %arg7[%62, %c0_26, %c0_27] : memref<8x8x128xf32, #tpu.memory_space<vmem>>, vector<1x8x128xf32>
    %64 = vector.shape_cast %63 : vector<1x8x128xf32> to vector<8x128xf32>
    %65 = vector.shape_cast %61 : vector<8x128xf32> to vector<1x8x128xf32>
    tpu.vector_store %arg7[%62, %c0_26, %c0_27], %65 {strides = array<i32>} : memref<8x8x128xf32, #tpu.memory_space<vmem>>, vector<1x8x128xf32>,
    %c1_i32 = arith.constant 1 : i32
    %66 = arith.index_cast %c1_i32 : i32 to index
    %c0_28 = arith.constant 0 : index
    %c0_29 = arith.constant 0 : index
    %67 = vector.load %arg8[%66, %c0_28, %c0_29] : memref<8x8x512xf32, #tpu.memory_space<vmem>>, vector<1x8x512xf32>
    %68 = vector.shape_cast %67 : vector<1x8x512xf32> to vector<8x512xf32>
    %69 = arith.truncf %57 : vector<8x128xf32> to vector<8x128xbf16>
    %c0_30 = arith.constant 0 : index
    %c0_31 = arith.constant 0 : index
    %70 = vector.load %arg5[%c0_30, %c0_31] : memref<128x512xbf16, #tpu.memory_space<vmem>>, vector<128x512xbf16>
    %cst_32 = arith.constant dense<0.000000e+00> : vector<8x512xf32>
    %71 = tpu.matmul %69, %70, %cst_32 {dimension_numbers = #tpu.dot_dimension_numbers<[1], [0], [0], [1], [0, 0, 1, 1], [], []>} : vector<8x128xbf16>, vector<128x512xbf16>, vector<8x512xf32> -> vector<8x512xf32>
    %72 = arith.addf %68, %71 : vector<8x512xf32>
    %73 = vector.extract_strided_slice %72 {offsets = [0, 0], sizes = [8, 128], strides = [1, 1]} : vector<8x512xf32> to vector<8x128xf32>
    %74 = arith.negf %73 : vector<8x128xf32>
    %75 = math.exp %74 : vector<8x128xf32>
    %cst_33 = arith.constant 1.000000e+00 : f32
    %76 = vector.broadcast %cst_33 : f32 to vector<8x128xf32>
    %77 = arith.addf %76, %75 : vector<8x128xf32>
    %78 = arith.divf %76, %77 : vector<8x128xf32>
    %79 = vector.extract_strided_slice %72 {offsets = [0, 128], sizes = [8, 128], strides = [1, 1]} : vector<8x512xf32> to vector<8x128xf32>
    %80 = arith.negf %79 : vector<8x128xf32>
    %81 = math.exp %80 : vector<8x128xf32>
    %cst_34 = arith.constant 1.000000e+00 : f32
    %82 = vector.broadcast %cst_34 : f32 to vector<8x128xf32>
    %83 = arith.addf %82, %81 : vector<8x128xf32>
    %84 = arith.divf %82, %83 : vector<8x128xf32>
    %85 = vector.extract_strided_slice %72 {offsets = [0, 256], sizes = [8, 128], strides = [1, 1]} : vector<8x512xf32> to vector<8x128xf32>
    %86 = math.tanh %85 : vector<8x128xf32>
    %87 = vector.extract_strided_slice %72 {offsets = [0, 384], sizes = [8, 128], strides = [1, 1]} : vector<8x512xf32> to vector<8x128xf32>
    %88 = arith.negf %87 : vector<8x128xf32>
    %89 = math.exp %88 : vector<8x128xf32>
    %cst_35 = arith.constant 1.000000e+00 : f32
    %90 = vector.broadcast %cst_35 : f32 to vector<8x128xf32>
    %91 = arith.addf %90, %89 : vector<8x128xf32>
    %92 = arith.divf %90, %91 : vector<8x128xf32>
    %93 = arith.mulf %84, %54 : vector<8x128xf32>
    %94 = arith.mulf %78, %86 : vector<8x128xf32>
    %95 = arith.addf %93, %94 : vector<8x128xf32>
    %96 = math.tanh %95 : vector<8x128xf32>
    %97 = arith.mulf %92, %96 : vector<8x128xf32>
    %98 = arith.addi %14, %c1_i32 : i32
    %99 = vector.broadcast %98 : i32 to vector<8x1xi32>
    %100 = arith.cmpi slt, %99, %13 : vector<8x1xi32>
    %101 = vector.shape_cast %100 : vector<8x1xi1> to vector<8x1xi1>
    %102 = vector.broadcast %101 : vector<8x1xi1> to vector<8x128xi1>
    %103 = arith.select %102, %95, %54 : vector<8x128xi1>, vector<8x128xf32>
    %104 = vector.shape_cast %100 : vector<8x1xi1> to vector<8x1xi1>
    %105 = vector.broadcast %104 : vector<8x1xi1> to vector<8x128xi1>
    %106 = arith.select %105, %97, %57 : vector<8x128xi1>, vector<8x128xf32>
    %cst_36 = arith.constant 0.000000e+00 : f32
    %107 = vector.shape_cast %100 : vector<8x1xi1> to vector<8x1xi1>
    %108 = vector.broadcast %107 : vector<8x1xi1> to vector<8x128xi1>
    %109 = vector.broadcast %cst_36 : f32 to vector<8x128xf32>
    %110 = arith.select %108, %97, %109 : vector<8x128xi1>, vector<8x128xf32>
    %111 = arith.index_cast %c1_i32 : i32 to index
    %c0_37 = arith.constant 0 : index
    %c0_38 = arith.constant 0 : index
    %112 = vector.load %arg7[%111, %c0_37, %c0_38] : memref<8x8x128xf32, #tpu.memory_space<vmem>>, vector<1x8x128xf32>
    %113 = vector.shape_cast %112 : vector<1x8x128xf32> to vector<8x128xf32>
    %114 = vector.shape_cast %110 : vector<8x128xf32> to vector<1x8x128xf32>
    tpu.vector_store %arg7[%111, %c0_37, %c0_38], %114 {strides = array<i32>} : memref<8x8x128xf32, #tpu.memory_space<vmem>>, vector<1x8x128xf32>,
    %c2_i32 = arith.constant 2 : i32
    %115 = arith.index_cast %c2_i32 : i32 to index
    %c0_39 = arith.constant 0 : index
    %c0_40 = arith.constant 0 : index
    %116 = vector.load %arg8[%115, %c0_39, %c0_40] : memref<8x8x512xf32, #tpu.memory_space<vmem>>, vector<1x8x512xf32>
    %117 = vector.shape_cast %116 : vector<1x8x512xf32> to vector<8x512xf32>
    %118 = arith.truncf %106 : vector<8x128xf32> to vector<8x128xbf16>
    %c0_41 = arith.constant 0 : index
    %c0_42 = arith.constant 0 : index
    %119 = vector.load %arg5[%c0_41, %c0_42] : memref<128x512xbf16, #tpu.memory_space<vmem>>, vector<128x512xbf16>
    %cst_43 = arith.constant dense<0.000000e+00> : vector<8x512xf32>
    %120 = tpu.matmul %118, %119, %cst_43 {dimension_numbers = #tpu.dot_dimension_numbers<[1], [0], [0], [1], [0, 0, 1, 1], [], []>} : vector<8x128xbf16>, vector<128x512xbf16>, vector<8x512xf32> -> vector<8x512xf32>
    %121 = arith.addf %117, %120 : vector<8x512xf32>
    %122 = vector.extract_strided_slice %121 {offsets = [0, 0], sizes = [8, 128], strides = [1, 1]} : vector<8x512xf32> to vector<8x128xf32>
    %123 = arith.negf %122 : vector<8x128xf32>
    %124 = math.exp %123 : vector<8x128xf32>
    %cst_44 = arith.constant 1.000000e+00 : f32
    %125 = vector.broadcast %cst_44 : f32 to vector<8x128xf32>
    %126 = arith.addf %125, %124 : vector<8x128xf32>
    %127 = arith.divf %125, %126 : vector<8x128xf32>
    %128 = vector.extract_strided_slice %121 {offsets = [0, 128], sizes = [8, 128], strides = [1, 1]} : vector<8x512xf32> to vector<8x128xf32>
    %129 = arith.negf %128 : vector<8x128xf32>
    %130 = math.exp %129 : vector<8x128xf32>
    %cst_45 = arith.constant 1.000000e+00 : f32
    %131 = vector.broadcast %cst_45 : f32 to vector<8x128xf32>
    %132 = arith.addf %131, %130 : vector<8x128xf32>
    %133 = arith.divf %131, %132 : vector<8x128xf32>
    %134 = vector.extract_strided_slice %121 {offsets = [0, 256], sizes = [8, 128], strides = [1, 1]} : vector<8x512xf32> to vector<8x128xf32>
    %135 = math.tanh %134 : vector<8x128xf32>
    %136 = vector.extract_strided_slice %121 {offsets = [0, 384], sizes = [8, 128], strides = [1, 1]} : vector<8x512xf32> to vector<8x128xf32>
    %137 = arith.negf %136 : vector<8x128xf32>
    %138 = math.exp %137 : vector<8x128xf32>
    %cst_46 = arith.constant 1.000000e+00 : f32
    %139 = vector.broadcast %cst_46 : f32 to vector<8x128xf32>
    %140 = arith.addf %139, %138 : vector<8x128xf32>
    %141 = arith.divf %139, %140 : vector<8x128xf32>
    %142 = arith.mulf %133, %103 : vector<8x128xf32>
    %143 = arith.mulf %127, %135 : vector<8x128xf32>
    %144 = arith.addf %142, %143 : vector<8x128xf32>
    %145 = math.tanh %144 : vector<8x128xf32>
    %146 = arith.mulf %141, %145 : vector<8x128xf32>
    %147 = arith.addi %14, %c2_i32 : i32
    %148 = vector.broadcast %147 : i32 to vector<8x1xi32>
    %149 = arith.cmpi slt, %148, %13 : vector<8x1xi32>
    %150 = vector.shape_cast %149 : vector<8x1xi1> to vector<8x1xi1>
    %151 = vector.broadcast %150 : vector<8x1xi1> to vector<8x128xi1>
    %152 = arith.select %151, %144, %103 : vector<8x128xi1>, vector<8x128xf32>
    %153 = vector.shape_cast %149 : vector<8x1xi1> to vector<8x1xi1>
    %154 = vector.broadcast %153 : vector<8x1xi1> to vector<8x128xi1>
    %155 = arith.select %154, %146, %106 : vector<8x128xi1>, vector<8x128xf32>
    %cst_47 = arith.constant 0.000000e+00 : f32
    %156 = vector.shape_cast %149 : vector<8x1xi1> to vector<8x1xi1>
    %157 = vector.broadcast %156 : vector<8x1xi1> to vector<8x128xi1>
    %158 = vector.broadcast %cst_47 : f32 to vector<8x128xf32>
    %159 = arith.select %157, %146, %158 : vector<8x128xi1>, vector<8x128xf32>
    %160 = arith.index_cast %c2_i32 : i32 to index
    %c0_48 = arith.constant 0 : index
    %c0_49 = arith.constant 0 : index
    %161 = vector.load %arg7[%160, %c0_48, %c0_49] : memref<8x8x128xf32, #tpu.memory_space<vmem>>, vector<1x8x128xf32>
    %162 = vector.shape_cast %161 : vector<1x8x128xf32> to vector<8x128xf32>
    %163 = vector.shape_cast %159 : vector<8x128xf32> to vector<1x8x128xf32>
    tpu.vector_store %arg7[%160, %c0_48, %c0_49], %163 {strides = array<i32>} : memref<8x8x128xf32, #tpu.memory_space<vmem>>, vector<1x8x128xf32>,
    %c3_i32 = arith.constant 3 : i32
    %164 = arith.index_cast %c3_i32 : i32 to index
    %c0_50 = arith.constant 0 : index
    %c0_51 = arith.constant 0 : index
    %165 = vector.load %arg8[%164, %c0_50, %c0_51] : memref<8x8x512xf32, #tpu.memory_space<vmem>>, vector<1x8x512xf32>
    %166 = vector.shape_cast %165 : vector<1x8x512xf32> to vector<8x512xf32>
    %167 = arith.truncf %155 : vector<8x128xf32> to vector<8x128xbf16>
    %c0_52 = arith.constant 0 : index
    %c0_53 = arith.constant 0 : index
    %168 = vector.load %arg5[%c0_52, %c0_53] : memref<128x512xbf16, #tpu.memory_space<vmem>>, vector<128x512xbf16>
    %cst_54 = arith.constant dense<0.000000e+00> : vector<8x512xf32>
    %169 = tpu.matmul %167, %168, %cst_54 {dimension_numbers = #tpu.dot_dimension_numbers<[1], [0], [0], [1], [0, 0, 1, 1], [], []>} : vector<8x128xbf16>, vector<128x512xbf16>, vector<8x512xf32> -> vector<8x512xf32>
    %170 = arith.addf %166, %169 : vector<8x512xf32>
    %171 = vector.extract_strided_slice %170 {offsets = [0, 0], sizes = [8, 128], strides = [1, 1]} : vector<8x512xf32> to vector<8x128xf32>
    %172 = arith.negf %171 : vector<8x128xf32>
    %173 = math.exp %172 : vector<8x128xf32>
    %cst_55 = arith.constant 1.000000e+00 : f32
    %174 = vector.broadcast %cst_55 : f32 to vector<8x128xf32>
    %175 = arith.addf %174, %173 : vector<8x128xf32>
    %176 = arith.divf %174, %175 : vector<8x128xf32>
    %177 = vector.extract_strided_slice %170 {offsets = [0, 128], sizes = [8, 128], strides = [1, 1]} : vector<8x512xf32> to vector<8x128xf32>
    %178 = arith.negf %177 : vector<8x128xf32>
    %179 = math.exp %178 : vector<8x128xf32>
    %cst_56 = arith.constant 1.000000e+00 : f32
    %180 = vector.broadcast %cst_56 : f32 to vector<8x128xf32>
    %181 = arith.addf %180, %179 : vector<8x128xf32>
    %182 = arith.divf %180, %181 : vector<8x128xf32>
    %183 = vector.extract_strided_slice %170 {offsets = [0, 256], sizes = [8, 128], strides = [1, 1]} : vector<8x512xf32> to vector<8x128xf32>
    %184 = math.tanh %183 : vector<8x128xf32>
    %185 = vector.extract_strided_slice %170 {offsets = [0, 384], sizes = [8, 128], strides = [1, 1]} : vector<8x512xf32> to vector<8x128xf32>
    %186 = arith.negf %185 : vector<8x128xf32>
    %187 = math.exp %186 : vector<8x128xf32>
    %cst_57 = arith.constant 1.000000e+00 : f32
    %188 = vector.broadcast %cst_57 : f32 to vector<8x128xf32>
    %189 = arith.addf %188, %187 : vector<8x128xf32>
    %190 = arith.divf %188, %189 : vector<8x128xf32>
    %191 = arith.mulf %182, %152 : vector<8x128xf32>
    %192 = arith.mulf %176, %184 : vector<8x128xf32>
    %193 = arith.addf %191, %192 : vector<8x128xf32>
    %194 = math.tanh %193 : vector<8x128xf32>
    %195 = arith.mulf %190, %194 : vector<8x128xf32>
    %196 = arith.addi %14, %c3_i32 : i32
    %197 = vector.broadcast %196 : i32 to vector<8x1xi32>
    %198 = arith.cmpi slt, %197, %13 : vector<8x1xi32>
    %199 = vector.shape_cast %198 : vector<8x1xi1> to vector<8x1xi1>
    %200 = vector.broadcast %199 : vector<8x1xi1> to vector<8x128xi1>
    %201 = arith.select %200, %193, %152 : vector<8x128xi1>, vector<8x128xf32>
    %202 = vector.shape_cast %198 : vector<8x1xi1> to vector<8x1xi1>
    %203 = vector.broadcast %202 : vector<8x1xi1> to vector<8x128xi1>
    %204 = arith.select %203, %195, %155 : vector<8x128xi1>, vector<8x128xf32>
    %cst_58 = arith.constant 0.000000e+00 : f32
    %205 = vector.shape_cast %198 : vector<8x1xi1> to vector<8x1xi1>
    %206 = vector.broadcast %205 : vector<8x1xi1> to vector<8x128xi1>
    %207 = vector.broadcast %cst_58 : f32 to vector<8x128xf32>
    %208 = arith.select %206, %195, %207 : vector<8x128xi1>, vector<8x128xf32>
    %209 = arith.index_cast %c3_i32 : i32 to index
    %c0_59 = arith.constant 0 : index
    %c0_60 = arith.constant 0 : index
    %210 = vector.load %arg7[%209, %c0_59, %c0_60] : memref<8x8x128xf32, #tpu.memory_space<vmem>>, vector<1x8x128xf32>
    %211 = vector.shape_cast %210 : vector<1x8x128xf32> to vector<8x128xf32>
    %212 = vector.shape_cast %208 : vector<8x128xf32> to vector<1x8x128xf32>
    tpu.vector_store %arg7[%209, %c0_59, %c0_60], %212 {strides = array<i32>} : memref<8x8x128xf32, #tpu.memory_space<vmem>>, vector<1x8x128xf32>,
    %c4_i32 = arith.constant 4 : i32
    %213 = arith.index_cast %c4_i32 : i32 to index
    %c0_61 = arith.constant 0 : index
    %c0_62 = arith.constant 0 : index
    %214 = vector.load %arg8[%213, %c0_61, %c0_62] : memref<8x8x512xf32, #tpu.memory_space<vmem>>, vector<1x8x512xf32>
    %215 = vector.shape_cast %214 : vector<1x8x512xf32> to vector<8x512xf32>
    %216 = arith.truncf %204 : vector<8x128xf32> to vector<8x128xbf16>
    %c0_63 = arith.constant 0 : index
    %c0_64 = arith.constant 0 : index
    %217 = vector.load %arg5[%c0_63, %c0_64] : memref<128x512xbf16, #tpu.memory_space<vmem>>, vector<128x512xbf16>
    %cst_65 = arith.constant dense<0.000000e+00> : vector<8x512xf32>
    %218 = tpu.matmul %216, %217, %cst_65 {dimension_numbers = #tpu.dot_dimension_numbers<[1], [0], [0], [1], [0, 0, 1, 1], [], []>} : vector<8x128xbf16>, vector<128x512xbf16>, vector<8x512xf32> -> vector<8x512xf32>
    %219 = arith.addf %215, %218 : vector<8x512xf32>
    %220 = vector.extract_strided_slice %219 {offsets = [0, 0], sizes = [8, 128], strides = [1, 1]} : vector<8x512xf32> to vector<8x128xf32>
    %221 = arith.negf %220 : vector<8x128xf32>
    %222 = math.exp %221 : vector<8x128xf32>
    %cst_66 = arith.constant 1.000000e+00 : f32
    %223 = vector.broadcast %cst_66 : f32 to vector<8x128xf32>
    %224 = arith.addf %223, %222 : vector<8x128xf32>
    %225 = arith.divf %223, %224 : vector<8x128xf32>
    %226 = vector.extract_strided_slice %219 {offsets = [0, 128], sizes = [8, 128], strides = [1, 1]} : vector<8x512xf32> to vector<8x128xf32>
    %227 = arith.negf %226 : vector<8x128xf32>
    %228 = math.exp %227 : vector<8x128xf32>
    %cst_67 = arith.constant 1.000000e+00 : f32
    %229 = vector.broadcast %cst_67 : f32 to vector<8x128xf32>
    %230 = arith.addf %229, %228 : vector<8x128xf32>
    %231 = arith.divf %229, %230 : vector<8x128xf32>
    %232 = vector.extract_strided_slice %219 {offsets = [0, 256], sizes = [8, 128], strides = [1, 1]} : vector<8x512xf32> to vector<8x128xf32>
    %233 = math.tanh %232 : vector<8x128xf32>
    %234 = vector.extract_strided_slice %219 {offsets = [0, 384], sizes = [8, 128], strides = [1, 1]} : vector<8x512xf32> to vector<8x128xf32>
    %235 = arith.negf %234 : vector<8x128xf32>
    %236 = math.exp %235 : vector<8x128xf32>
    %cst_68 = arith.constant 1.000000e+00 : f32
    %237 = vector.broadcast %cst_68 : f32 to vector<8x128xf32>
    %238 = arith.addf %237, %236 : vector<8x128xf32>
    %239 = arith.divf %237, %238 : vector<8x128xf32>
    %240 = arith.mulf %231, %201 : vector<8x128xf32>
    %241 = arith.mulf %225, %233 : vector<8x128xf32>
    %242 = arith.addf %240, %241 : vector<8x128xf32>
    %243 = math.tanh %242 : vector<8x128xf32>
    %244 = arith.mulf %239, %243 : vector<8x128xf32>
    %245 = arith.addi %14, %c4_i32 : i32
    %246 = vector.broadcast %245 : i32 to vector<8x1xi32>
    %247 = arith.cmpi slt, %246, %13 : vector<8x1xi32>
    %248 = vector.shape_cast %247 : vector<8x1xi1> to vector<8x1xi1>
    %249 = vector.broadcast %248 : vector<8x1xi1> to vector<8x128xi1>
    %250 = arith.select %249, %242, %201 : vector<8x128xi1>, vector<8x128xf32>
    %251 = vector.shape_cast %247 : vector<8x1xi1> to vector<8x1xi1>
    %252 = vector.broadcast %251 : vector<8x1xi1> to vector<8x128xi1>
    %253 = arith.select %252, %244, %204 : vector<8x128xi1>, vector<8x128xf32>
    %cst_69 = arith.constant 0.000000e+00 : f32
    %254 = vector.shape_cast %247 : vector<8x1xi1> to vector<8x1xi1>
    %255 = vector.broadcast %254 : vector<8x1xi1> to vector<8x128xi1>
    %256 = vector.broadcast %cst_69 : f32 to vector<8x128xf32>
    %257 = arith.select %255, %244, %256 : vector<8x128xi1>, vector<8x128xf32>
    %258 = arith.index_cast %c4_i32 : i32 to index
    %c0_70 = arith.constant 0 : index
    %c0_71 = arith.constant 0 : index
    %259 = vector.load %arg7[%258, %c0_70, %c0_71] : memref<8x8x128xf32, #tpu.memory_space<vmem>>, vector<1x8x128xf32>
    %260 = vector.shape_cast %259 : vector<1x8x128xf32> to vector<8x128xf32>
    %261 = vector.shape_cast %257 : vector<8x128xf32> to vector<1x8x128xf32>
    tpu.vector_store %arg7[%258, %c0_70, %c0_71], %261 {strides = array<i32>} : memref<8x8x128xf32, #tpu.memory_space<vmem>>, vector<1x8x128xf32>,
    %c5_i32 = arith.constant 5 : i32
    %262 = arith.index_cast %c5_i32 : i32 to index
    %c0_72 = arith.constant 0 : index
    %c0_73 = arith.constant 0 : index
    %263 = vector.load %arg8[%262, %c0_72, %c0_73] : memref<8x8x512xf32, #tpu.memory_space<vmem>>, vector<1x8x512xf32>
    %264 = vector.shape_cast %263 : vector<1x8x512xf32> to vector<8x512xf32>
    %265 = arith.truncf %253 : vector<8x128xf32> to vector<8x128xbf16>
    %c0_74 = arith.constant 0 : index
    %c0_75 = arith.constant 0 : index
    %266 = vector.load %arg5[%c0_74, %c0_75] : memref<128x512xbf16, #tpu.memory_space<vmem>>, vector<128x512xbf16>
    %cst_76 = arith.constant dense<0.000000e+00> : vector<8x512xf32>
    %267 = tpu.matmul %265, %266, %cst_76 {dimension_numbers = #tpu.dot_dimension_numbers<[1], [0], [0], [1], [0, 0, 1, 1], [], []>} : vector<8x128xbf16>, vector<128x512xbf16>, vector<8x512xf32> -> vector<8x512xf32>
    %268 = arith.addf %264, %267 : vector<8x512xf32>
    %269 = vector.extract_strided_slice %268 {offsets = [0, 0], sizes = [8, 128], strides = [1, 1]} : vector<8x512xf32> to vector<8x128xf32>
    %270 = arith.negf %269 : vector<8x128xf32>
    %271 = math.exp %270 : vector<8x128xf32>
    %cst_77 = arith.constant 1.000000e+00 : f32
    %272 = vector.broadcast %cst_77 : f32 to vector<8x128xf32>
    %273 = arith.addf %272, %271 : vector<8x128xf32>
    %274 = arith.divf %272, %273 : vector<8x128xf32>
    %275 = vector.extract_strided_slice %268 {offsets = [0, 128], sizes = [8, 128], strides = [1, 1]} : vector<8x512xf32> to vector<8x128xf32>
    %276 = arith.negf %275 : vector<8x128xf32>
    %277 = math.exp %276 : vector<8x128xf32>
    %cst_78 = arith.constant 1.000000e+00 : f32
    %278 = vector.broadcast %cst_78 : f32 to vector<8x128xf32>
    %279 = arith.addf %278, %277 : vector<8x128xf32>
    %280 = arith.divf %278, %279 : vector<8x128xf32>
    %281 = vector.extract_strided_slice %268 {offsets = [0, 256], sizes = [8, 128], strides = [1, 1]} : vector<8x512xf32> to vector<8x128xf32>
    %282 = math.tanh %281 : vector<8x128xf32>
    %283 = vector.extract_strided_slice %268 {offsets = [0, 384], sizes = [8, 128], strides = [1, 1]} : vector<8x512xf32> to vector<8x128xf32>
    %284 = arith.negf %283 : vector<8x128xf32>
    %285 = math.exp %284 : vector<8x128xf32>
    %cst_79 = arith.constant 1.000000e+00 : f32
    %286 = vector.broadcast %cst_79 : f32 to vector<8x128xf32>
    %287 = arith.addf %286, %285 : vector<8x128xf32>
    %288 = arith.divf %286, %287 : vector<8x128xf32>
    %289 = arith.mulf %280, %250 : vector<8x128xf32>
    %290 = arith.mulf %274, %282 : vector<8x128xf32>
    %291 = arith.addf %289, %290 : vector<8x128xf32>
    %292 = math.tanh %291 : vector<8x128xf32>
    %293 = arith.mulf %288, %292 : vector<8x128xf32>
    %294 = arith.addi %14, %c5_i32 : i32
    %295 = vector.broadcast %294 : i32 to vector<8x1xi32>
    %296 = arith.cmpi slt, %295, %13 : vector<8x1xi32>
    %297 = vector.shape_cast %296 : vector<8x1xi1> to vector<8x1xi1>
    %298 = vector.broadcast %297 : vector<8x1xi1> to vector<8x128xi1>
    %299 = arith.select %298, %291, %250 : vector<8x128xi1>, vector<8x128xf32>
    %300 = vector.shape_cast %296 : vector<8x1xi1> to vector<8x1xi1>
    %301 = vector.broadcast %300 : vector<8x1xi1> to vector<8x128xi1>
    %302 = arith.select %301, %293, %253 : vector<8x128xi1>, vector<8x128xf32>
    %cst_80 = arith.constant 0.000000e+00 : f32
    %303 = vector.shape_cast %296 : vector<8x1xi1> to vector<8x1xi1>
    %304 = vector.broadcast %303 : vector<8x1xi1> to vector<8x128xi1>
    %305 = vector.broadcast %cst_80 : f32 to vector<8x128xf32>
    %306 = arith.select %304, %293, %305 : vector<8x128xi1>, vector<8x128xf32>
    %307 = arith.index_cast %c5_i32 : i32 to index
    %c0_81 = arith.constant 0 : index
    %c0_82 = arith.constant 0 : index
    %308 = vector.load %arg7[%307, %c0_81, %c0_82] : memref<8x8x128xf32, #tpu.memory_space<vmem>>, vector<1x8x128xf32>
    %309 = vector.shape_cast %308 : vector<1x8x128xf32> to vector<8x128xf32>
    %310 = vector.shape_cast %306 : vector<8x128xf32> to vector<1x8x128xf32>
    tpu.vector_store %arg7[%307, %c0_81, %c0_82], %310 {strides = array<i32>} : memref<8x8x128xf32, #tpu.memory_space<vmem>>, vector<1x8x128xf32>,
    %c6_i32 = arith.constant 6 : i32
    %311 = arith.index_cast %c6_i32 : i32 to index
    %c0_83 = arith.constant 0 : index
    %c0_84 = arith.constant 0 : index
    %312 = vector.load %arg8[%311, %c0_83, %c0_84] : memref<8x8x512xf32, #tpu.memory_space<vmem>>, vector<1x8x512xf32>
    %313 = vector.shape_cast %312 : vector<1x8x512xf32> to vector<8x512xf32>
    %314 = arith.truncf %302 : vector<8x128xf32> to vector<8x128xbf16>
    %c0_85 = arith.constant 0 : index
    %c0_86 = arith.constant 0 : index
    %315 = vector.load %arg5[%c0_85, %c0_86] : memref<128x512xbf16, #tpu.memory_space<vmem>>, vector<128x512xbf16>
    %cst_87 = arith.constant dense<0.000000e+00> : vector<8x512xf32>
    %316 = tpu.matmul %314, %315, %cst_87 {dimension_numbers = #tpu.dot_dimension_numbers<[1], [0], [0], [1], [0, 0, 1, 1], [], []>} : vector<8x128xbf16>, vector<128x512xbf16>, vector<8x512xf32> -> vector<8x512xf32>
    %317 = arith.addf %313, %316 : vector<8x512xf32>
    %318 = vector.extract_strided_slice %317 {offsets = [0, 0], sizes = [8, 128], strides = [1, 1]} : vector<8x512xf32> to vector<8x128xf32>
    %319 = arith.negf %318 : vector<8x128xf32>
    %320 = math.exp %319 : vector<8x128xf32>
    %cst_88 = arith.constant 1.000000e+00 : f32
    %321 = vector.broadcast %cst_88 : f32 to vector<8x128xf32>
    %322 = arith.addf %321, %320 : vector<8x128xf32>
    %323 = arith.divf %321, %322 : vector<8x128xf32>
    %324 = vector.extract_strided_slice %317 {offsets = [0, 128], sizes = [8, 128], strides = [1, 1]} : vector<8x512xf32> to vector<8x128xf32>
    %325 = arith.negf %324 : vector<8x128xf32>
    %326 = math.exp %325 : vector<8x128xf32>
    %cst_89 = arith.constant 1.000000e+00 : f32
    %327 = vector.broadcast %cst_89 : f32 to vector<8x128xf32>
    %328 = arith.addf %327, %326 : vector<8x128xf32>
    %329 = arith.divf %327, %328 : vector<8x128xf32>
    %330 = vector.extract_strided_slice %317 {offsets = [0, 256], sizes = [8, 128], strides = [1, 1]} : vector<8x512xf32> to vector<8x128xf32>
    %331 = math.tanh %330 : vector<8x128xf32>
    %332 = vector.extract_strided_slice %317 {offsets = [0, 384], sizes = [8, 128], strides = [1, 1]} : vector<8x512xf32> to vector<8x128xf32>
    %333 = arith.negf %332 : vector<8x128xf32>
    %334 = math.exp %333 : vector<8x128xf32>
    %cst_90 = arith.constant 1.000000e+00 : f32
    %335 = vector.broadcast %cst_90 : f32 to vector<8x128xf32>
    %336 = arith.addf %335, %334 : vector<8x128xf32>
    %337 = arith.divf %335, %336 : vector<8x128xf32>
    %338 = arith.mulf %329, %299 : vector<8x128xf32>
    %339 = arith.mulf %323, %331 : vector<8x128xf32>
    %340 = arith.addf %338, %339 : vector<8x128xf32>
    %341 = math.tanh %340 : vector<8x128xf32>
    %342 = arith.mulf %337, %341 : vector<8x128xf32>
    %343 = arith.addi %14, %c6_i32 : i32
    %344 = vector.broadcast %343 : i32 to vector<8x1xi32>
    %345 = arith.cmpi slt, %344, %13 : vector<8x1xi32>
    %346 = vector.shape_cast %345 : vector<8x1xi1> to vector<8x1xi1>
    %347 = vector.broadcast %346 : vector<8x1xi1> to vector<8x128xi1>
    %348 = arith.select %347, %340, %299 : vector<8x128xi1>, vector<8x128xf32>
    %349 = vector.shape_cast %345 : vector<8x1xi1> to vector<8x1xi1>
    %350 = vector.broadcast %349 : vector<8x1xi1> to vector<8x128xi1>
    %351 = arith.select %350, %342, %302 : vector<8x128xi1>, vector<8x128xf32>
    %cst_91 = arith.constant 0.000000e+00 : f32
    %352 = vector.shape_cast %345 : vector<8x1xi1> to vector<8x1xi1>
    %353 = vector.broadcast %352 : vector<8x1xi1> to vector<8x128xi1>
    %354 = vector.broadcast %cst_91 : f32 to vector<8x128xf32>
    %355 = arith.select %353, %342, %354 : vector<8x128xi1>, vector<8x128xf32>
    %356 = arith.index_cast %c6_i32 : i32 to index
    %c0_92 = arith.constant 0 : index
    %c0_93 = arith.constant 0 : index
    %357 = vector.load %arg7[%356, %c0_92, %c0_93] : memref<8x8x128xf32, #tpu.memory_space<vmem>>, vector<1x8x128xf32>
    %358 = vector.shape_cast %357 : vector<1x8x128xf32> to vector<8x128xf32>
    %359 = vector.shape_cast %355 : vector<8x128xf32> to vector<1x8x128xf32>
    tpu.vector_store %arg7[%356, %c0_92, %c0_93], %359 {strides = array<i32>} : memref<8x8x128xf32, #tpu.memory_space<vmem>>, vector<1x8x128xf32>,
    %c7_i32 = arith.constant 7 : i32
    %360 = arith.index_cast %c7_i32 : i32 to index
    %c0_94 = arith.constant 0 : index
    %c0_95 = arith.constant 0 : index
    %361 = vector.load %arg8[%360, %c0_94, %c0_95] : memref<8x8x512xf32, #tpu.memory_space<vmem>>, vector<1x8x512xf32>
    %362 = vector.shape_cast %361 : vector<1x8x512xf32> to vector<8x512xf32>
    %363 = arith.truncf %351 : vector<8x128xf32> to vector<8x128xbf16>
    %c0_96 = arith.constant 0 : index
    %c0_97 = arith.constant 0 : index
    %364 = vector.load %arg5[%c0_96, %c0_97] : memref<128x512xbf16, #tpu.memory_space<vmem>>, vector<128x512xbf16>
    %cst_98 = arith.constant dense<0.000000e+00> : vector<8x512xf32>
    %365 = tpu.matmul %363, %364, %cst_98 {dimension_numbers = #tpu.dot_dimension_numbers<[1], [0], [0], [1], [0, 0, 1, 1], [], []>} : vector<8x128xbf16>, vector<128x512xbf16>, vector<8x512xf32> -> vector<8x512xf32>
    %366 = arith.addf %362, %365 : vector<8x512xf32>
    %367 = vector.extract_strided_slice %366 {offsets = [0, 0], sizes = [8, 128], strides = [1, 1]} : vector<8x512xf32> to vector<8x128xf32>
    %368 = arith.negf %367 : vector<8x128xf32>
    %369 = math.exp %368 : vector<8x128xf32>
    %cst_99 = arith.constant 1.000000e+00 : f32
    %370 = vector.broadcast %cst_99 : f32 to vector<8x128xf32>
    %371 = arith.addf %370, %369 : vector<8x128xf32>
    %372 = arith.divf %370, %371 : vector<8x128xf32>
    %373 = vector.extract_strided_slice %366 {offsets = [0, 128], sizes = [8, 128], strides = [1, 1]} : vector<8x512xf32> to vector<8x128xf32>
    %374 = arith.negf %373 : vector<8x128xf32>
    %375 = math.exp %374 : vector<8x128xf32>
    %cst_100 = arith.constant 1.000000e+00 : f32
    %376 = vector.broadcast %cst_100 : f32 to vector<8x128xf32>
    %377 = arith.addf %376, %375 : vector<8x128xf32>
    %378 = arith.divf %376, %377 : vector<8x128xf32>
    %379 = vector.extract_strided_slice %366 {offsets = [0, 256], sizes = [8, 128], strides = [1, 1]} : vector<8x512xf32> to vector<8x128xf32>
    %380 = math.tanh %379 : vector<8x128xf32>
    %381 = vector.extract_strided_slice %366 {offsets = [0, 384], sizes = [8, 128], strides = [1, 1]} : vector<8x512xf32> to vector<8x128xf32>
    %382 = arith.negf %381 : vector<8x128xf32>
    %383 = math.exp %382 : vector<8x128xf32>
    %cst_101 = arith.constant 1.000000e+00 : f32
    %384 = vector.broadcast %cst_101 : f32 to vector<8x128xf32>
    %385 = arith.addf %384, %383 : vector<8x128xf32>
    %386 = arith.divf %384, %385 : vector<8x128xf32>
    %387 = arith.mulf %378, %348 : vector<8x128xf32>
    %388 = arith.mulf %372, %380 : vector<8x128xf32>
    %389 = arith.addf %387, %388 : vector<8x128xf32>
    %390 = math.tanh %389 : vector<8x128xf32>
    %391 = arith.mulf %386, %390 : vector<8x128xf32>
    %392 = arith.addi %14, %c7_i32 : i32
    %393 = vector.broadcast %392 : i32 to vector<8x1xi32>
    %394 = arith.cmpi slt, %393, %13 : vector<8x1xi32>
    %395 = vector.shape_cast %394 : vector<8x1xi1> to vector<8x1xi1>
    %396 = vector.broadcast %395 : vector<8x1xi1> to vector<8x128xi1>
    %397 = arith.select %396, %389, %348 : vector<8x128xi1>, vector<8x128xf32>
    %398 = vector.shape_cast %394 : vector<8x1xi1> to vector<8x1xi1>
    %399 = vector.broadcast %398 : vector<8x1xi1> to vector<8x128xi1>
    %400 = arith.select %399, %391, %351 : vector<8x128xi1>, vector<8x128xf32>
    %cst_102 = arith.constant 0.000000e+00 : f32
    %401 = vector.shape_cast %394 : vector<8x1xi1> to vector<8x1xi1>
    %402 = vector.broadcast %401 : vector<8x1xi1> to vector<8x128xi1>
    %403 = vector.broadcast %cst_102 : f32 to vector<8x128xf32>
    %404 = arith.select %402, %391, %403 : vector<8x128xi1>, vector<8x128xf32>
    %405 = arith.index_cast %c7_i32 : i32 to index
    %c0_103 = arith.constant 0 : index
    %c0_104 = arith.constant 0 : index
    %406 = vector.load %arg7[%405, %c0_103, %c0_104] : memref<8x8x128xf32, #tpu.memory_space<vmem>>, vector<1x8x128xf32>
    %407 = vector.shape_cast %406 : vector<1x8x128xf32> to vector<8x128xf32>
    %408 = vector.shape_cast %404 : vector<8x128xf32> to vector<1x8x128xf32>
    tpu.vector_store %arg7[%405, %c0_103, %c0_104], %408 {strides = array<i32>} : memref<8x8x128xf32, #tpu.memory_space<vmem>>, vector<1x8x128xf32>,
    %c8_i32_105 = arith.constant 8 : i32
    %c0_106 = arith.constant 0 : index
    %c0_107 = arith.constant 0 : index
    %409 = vector.load %arg9[%c0_106, %c0_107] : memref<8x128xf32, #tpu.memory_space<vmem>>, vector<8x128xf32>
    tpu.vector_store %arg9[%c0_106, %c0_107], %400 {strides = array<i32>} : memref<8x128xf32, #tpu.memory_space<vmem>>, vector<8x128xf32>,
    %c0_108 = arith.constant 0 : index
    %c0_109 = arith.constant 0 : index
    %410 = vector.load %arg10[%c0_108, %c0_109] : memref<8x128xf32, #tpu.memory_space<vmem>>, vector<8x128xf32>
    tpu.vector_store %arg10[%c0_108, %c0_109], %397 {strides = array<i32>} : memref<8x128xf32, #tpu.memory_space<vmem>>, vector<8x128xf32>,
    return
  }
  func.func @transform_0(%arg0: i32, %arg1: i32) -> (i32, i32, i32) {
    %c0_i32 = arith.constant 0 : i32
    %c0_i32_0 = arith.constant 0 : i32
    return %arg1, %arg0, %c0_i32 : i32, i32, i32
  }
  func.func @transform_1(%arg0: i32, %arg1: i32) -> (i32, i32) {
    %c0_i32 = arith.constant 0 : i32
    %c0_i32_0 = arith.constant 0 : i32
    return %arg0, %c0_i32 : i32, i32
  }
  func.func @transform_2(%arg0: i32, %arg1: i32) -> (i32, i32) {
    %c0_i32 = arith.constant 0 : i32
    %c0_i32_0 = arith.constant 0 : i32
    %c0_i32_1 = arith.constant 0 : i32
    return %c0_i32, %c0_i32_0 : i32, i32
  }
  func.func @transform_3(%arg0: i32, %arg1: i32) -> (i32, i32) {
    %c0_i32 = arith.constant 0 : i32
    %c0_i32_0 = arith.constant 0 : i32
    %c0_i32_1 = arith.constant 0 : i32
    return %c0_i32, %c0_i32_0 : i32, i32
  }
  func.func @transform_4(%arg0: i32, %arg1: i32) -> (i32, i32) {
    %c0_i32 = arith.constant 0 : i32
    %c0_i32_0 = arith.constant 0 : i32
    %c0_i32_1 = arith.constant 0 : i32
    return %c0_i32, %c0_i32_0 : i32, i32
  }
  func.func @transform_5(%arg0: i32, %arg1: i32) -> (i32, i32, i32) {
    %c0_i32 = arith.constant 0 : i32
    %c0_i32_0 = arith.constant 0 : i32
    return %arg1, %arg0, %c0_i32 : i32, i32, i32
  }
}

</mosaic_0001>

<bundles_post_ra>
// kernel: tpu_custom_call.1
= control target key start
LH: loop header
LB: loop body
LE: loop exit
PB: predicated region body
PF: predicated region fallthrough
CT: control target
= control target key end

     0   :  { %10 = vsyncpa [#allocation6], 0  ;;  %s4280_s0 = inlined_call_operand.hbm [shape: f32[8,8,16], index: 0, kind: input, shape index: {}]   ;;  %s4281_s1 = inlined_call_operand.vmem [shape: s32[8,1], index: 1, kind: input, shape index: {}]   ;;  %s4282_s2 = inlined_call_operand.hbm [shape: bf16[16,512], index: 2, kind: input, shape index: {}]   ;;  %s4283_s3 = inlined_call_operand.hbm [shape: bf16[128,512], index: 3, kind: input, shape index: {}]   ;;  %s4284_s4 = inlined_call_operand.vmem [shape: f32[1,512], index: 4, kind: input, shape index: {}]   ;;  %s4285_s5 = inlined_call_operand.hbm [shape: f32[8,8,128], index: 5, kind: output, shape index: {}]  }
   0x1   :  { %11 = vsyncpa [#allocation9], 0 }
   0x2   :  { %12 = vsyncpa [#allocation7], 0  ;;  %s3597_s18 = smov [#allocation8]   ;;  %s3503_s22 = scalar_lea.hbm %s4282_s2, 512 }
   0x3   :  { %s32_s19 = sshll.u32 %s3597_s18, 4  ;;  %p3504_p0 = scmp.ne.s32.totalorder %s4282_s2, %s3503_s22  ;;  %s33_s19 = int_to_ptr.vmem [resolvable:$true] %s32_s19 }
   0x4   :  { %p3507_p1 = scmp.lt.u32.totalorder %s3503_s22, %s4282_s2 }
   0x6   :  { %p3509_p2 = pnand %p3507_p1, %p3504_p0 }
   0x8   :  { %3512 = shalt.err (!%p3509_p2)
}
   0x9   :  { %s3513_s27 = scalar_lea.vmem %s33_s19, 512  ;;  %p3518_p4 = scmp.lt.s32.totalorder %s33_s19, %s33_s19 }
   0xa   :  { %p3514_p3 = scmp.ne.s32.totalorder %s33_s19, %s3513_s27  ;;  %p3519_p5 = scmp.lt.s32.totalorder %s3513_s27, %s3513_s27 }
   0xc   :  { %p3520_p6 = por %p3519_p5, %p3518_p4 }
   0xe   :  { %p3521_p7 = pnand %p3520_p6, %p3514_p3 }
  0x10   :  { %3524 = shalt.err (!%p3521_p7)
}
  0x11   :  { %s3598_s28 = smov 256   ;;  %s3599_s29 = smov 16  }
  0x12   :  { %38 = dma.hbm_to_vmem [thread:$0]  %s4282_s2, 512, %s33_s19, [#allocation9], %s3598_s28, %s3598_s28, %s3599_s29  }
  0x13   :  { %s3600_s7 = smov [#allocation5]   ;;  %s3525_s11 = scalar_lea.hbm %s4280_s0, 1024 }
  0x14   :  { %s18_s8 = sshll.u32 %s3600_s7, 4  ;;  %p3526_p8 = scmp.ne.s32.totalorder %s4280_s0, %s3525_s11  ;;  %s19_s8 = int_to_ptr.vmem [resolvable:$true] %s18_s8 }
  0x15   :  { %p3529_p9 = scmp.lt.u32.totalorder %s3525_s11, %s4280_s0 }
  0x17   :  { %p3531_p10 = pnand %p3529_p9, %p3526_p8 }
  0x19   :  { %3534 = shalt.err (!%p3531_p10)
}
  0x1a   :  { %s3535_s16 = scalar_lea.vmem %s19_s8, 1024  ;;  %p3540_p12 = scmp.lt.s32.totalorder %s19_s8, %s19_s8 }
  0x1b   :  { %p3536_p11 = scmp.ne.s32.totalorder %s19_s8, %s3535_s16  ;;  %p3541_p13 = scmp.lt.s32.totalorder %s3535_s16, %s3535_s16 }
  0x1d   :  { %p3542_p0 = por %p3541_p13, %p3540_p12 }
  0x1f   :  { %p3543_p1 = pnand %p3542_p0, %p3536_p11 }
  0x21   :  { %3546 = shalt.err (!%p3543_p1)
}
  0x22   :  { %s3601_s2 = smov 128   ;;  %s3602_s17 = smov 8  }
  0x23   :  { %24 = dma.hbm_to_vmem [thread:$0]  %s4280_s0, 1024, %s19_s8, [#allocation6], %s3601_s2, %s3601_s2, %s3602_s17  }
  0x24   :  { %s3603_s20 = smov [#allocation10]   ;;  %s3547_s24 = scalar_lea.hbm %s4283_s3, 4096 }
  0x25   :  { %s44_s21 = sshll.u32 %s3603_s20, 4  ;;  %p3548_p2 = scmp.ne.s32.totalorder %s4283_s3, %s3547_s24  ;;  %s45_s21 = int_to_ptr.vmem [resolvable:$true] %s44_s21 }
  0x26   :  { %p3551_p3 = scmp.lt.u32.totalorder %s3547_s24, %s4283_s3 }
  0x28   :  { %p3553_p4 = pnand %p3551_p3, %p3548_p2 }
  0x2a   :  { %3556 = shalt.err (!%p3553_p4)
}
  0x2b   :  { %s3557_s6 = scalar_lea.vmem %s45_s21, 4096  ;;  %p3562_p6 = scmp.lt.s32.totalorder %s45_s21, %s45_s21 }
  0x2c   :  { %p3558_p5 = scmp.ne.s32.totalorder %s45_s21, %s3557_s6  ;;  %p3563_p7 = scmp.lt.s32.totalorder %s3557_s6, %s3557_s6 }
  0x2e   :  { %p3564_p8 = por %p3563_p7, %p3562_p6 }
  0x30   :  { %p3565_p9 = pnand %p3564_p8, %p3558_p5 }
  0x32   :  { %3568 = shalt.err (!%p3565_p9)
}
  0x33   :  { %50 = dma.hbm_to_vmem [thread:$0]  %s4283_s3, 4096, %s45_s21, [#allocation9], %s3598_s28, %s3598_s28, %s3599_s29  }
  0x34   :  { %3591 = dma.done.wait [#allocation6], 1024  }
  0x35   :  { %3592 = vsyncadd [#allocation6], 4294966272 }
  0x36   :  { %3593 = dma.done.wait [#allocation9], 4608  }
  0x37   :  { %3594 = vsyncadd [#allocation9], 4294962688  ;;  %v4286_v0 = vmov 0   ;;  %v3225_v1 = vld [vmem:[#allocation8 + $0x4] ss:$16 sps:$4 sm:$0xff]   ;;  %v70_v6 = vld [vmem:[#allocation5 + $0x8] sm:$0xff]  ;;  %v87_v55 = vlaneseq }
  0x38   :  { %172 = vmatprep.mubr.bf16.mxu0 %v4286_v0  ;;  %245 = vmatprep.mubr.bf16.mxu1 %v4286_v0  ;;  %v3227_v2 = vld [vmem:[#allocation8 + $0xc] ss:$16 sps:$4 sm:$0xff]   ;;  %v3229_v3 = vld [vmem:[#allocation8] ss:$16 sps:$4 sm:$0xff]   ;;  %v3230_v4 = vld [vmem:[#allocation8 + $0x8] ss:$16 sps:$4 sm:$0xff]  }
  0x39   :  { %3223 = vset.pattern.permute.xlu0 %v4286_v0  ;;  %3224 = vset.pattern.permute.xlu1 %v4286_v0  ;;  %v69_v5 = vld [vmem:[#allocation5] sm:$0xff]  ;;  %vm127_vm0 = vcmask 130048   ;;  %v3690_v10 = vld [vmem:[#allocation10 + $0x8] ss:$16 sps:$4 sm:$0xff]   ;;  %v3692_v11 = vld [vmem:[#allocation10 + $0xc] ss:$16 sps:$4 sm:$0xff]  }
  0x3a   :  { %140 = vmatprep.subr.bf16.mxu0 %v3225_v1  ;;  %213 = vmatprep.subr.bf16.mxu1 %v3227_v2  ;;  %v77_v7 = vpack.c.bf16 %v70_v6, %v69_v5  ;;  %v3686_v8 = vld [vmem:[#allocation10] ss:$16 sps:$4 sm:$0xff]   ;;  %v3688_v9 = vld [vmem:[#allocation10 + $0x4] ss:$16 sps:$4 sm:$0xff]   ;;  %v3703_v14 = vld [vmem:[#allocation10 + $0x28] ss:$16 sps:$4 sm:$0xff]  }
  0x3b   :  { %141 = vmatpush1.bf16.msra.mxu0 %v3229_v3  ;;  %214 = vmatpush1.bf16.msra.mxu1 %v3230_v4  ;;  %v3695_v12 = vld [vmem:[#allocation10 + $0x20] ss:$16 sps:$4 sm:$0xff]   ;;  %v3699_v13 = vld [vmem:[#allocation10 + $0x24] ss:$16 sps:$4 sm:$0xff]   ;;  %v3705_v15 = vld [vmem:[#allocation10 + $0x2c] ss:$16 sps:$4 sm:$0xff]  }
  0x3c   :  { %519 = vmatprep.subr.bf16.mxu0 %v3688_v9  ;;  %560 = vmatprep.subr.bf16.mxu1 %v3692_v11  ;;  %v71_v16 = vld [vmem:[#allocation5 + $0x10] sm:$0xff]  ;;  %v72_v17 = vld [vmem:[#allocation5 + $0x18] sm:$0xff]  ;;  %v73_v26 = vld [vmem:[#allocation5 + $0x20] sm:$0xff]  ;;  %v3605_v53 = vmov 0.0|0.0   ;;  %v88_v56 = vshrl.u32 %v87_v55, 7 }
  0x3d   :  { %v3711_v18 = vld [vmem:[#allocation10 + $0x44] ss:$16 sps:$4 sm:$0xff]   ;;  %v78_v19 = vpack.c.bf16 %v72_v17, %v71_v16  ;;  %v3714_v20 = vld [vmem:[#allocation10 + $0x40] ss:$16 sps:$4 sm:$0xff]   ;;  %v3716_v21 = vld [vmem:[#allocation10 + $0x4c] ss:$16 sps:$4 sm:$0xff]  }
  0x3e   :  { %2911 = vmatmul.mubr.msk.bf16.vlgmr.msra.gmra.mrb[0].mxu0 %vm127_vm0, %v77_v7  ;;  %2915 = vmatmul.mubr.msk.bf16.vlgmr.msra.gmra.mrb[0].mxu1 %vm127_vm0, %v77_v7  ;;  %v3719_v22 = vld [vmem:[#allocation10 + $0x48] ss:$16 sps:$4 sm:$0xff]   ;;  %v3723_v23 = vld [vmem:[#allocation10 + $0x64] ss:$16 sps:$4 sm:$0xff]   ;;  %v3726_v24 = vld [vmem:[#allocation10 + $0x6c] ss:$16 sps:$4 sm:$0xff]  }
  0x3f   :  { %520 = vmatpush1.bf16.msra.mxu0 %v3686_v8  ;;  %561 = vmatpush1.bf16.msra.mxu1 %v3690_v10  ;;  %v3730_v25 = vld [vmem:[#allocation10 + $0x60] ss:$16 sps:$4 sm:$0xff]   ;;  %v74_v27 = vld [vmem:[#allocation5 + $0x28] sm:$0xff]  ;;  %v3738_v29 = vld [vmem:[#allocation10 + $0x84] ss:$16 sps:$4 sm:$0xff]   ;;  %v97_v57 = vsub.s32 2, %v88_v56 }
  0x40   :  { %521 = vmatprep.subr.bf16.mxu0 %v3699_v13  ;;  %562 = vmatprep.subr.bf16.mxu1 %v3705_v15  ;;  %v3736_v28 = vld [vmem:[#allocation10 + $0x68] ss:$16 sps:$4 sm:$0xff]   ;;  %v3742_v30 = vld [vmem:[#allocation10 + $0x8c] ss:$16 sps:$4 sm:$0xff]   ;;  %v79_v31 = vpack.c.bf16 %v74_v27, %v73_v26  ;;  %v3745_v32 = vld [vmem:[#allocation10 + $0x80] ss:$16 sps:$4 sm:$0xff]  }
  0x41   :  { %182 = vmatprep.mubr.bf16.mxu0 %v4286_v0  ;;  %255 = vmatprep.mubr.bf16.mxu1 %v4286_v0  ;;  %v3747_v33 = vld [vmem:[#allocation10 + $0x88] ss:$16 sps:$4 sm:$0xff]   ;;  %v3751_v34 = vld [vmem:[#allocation10 + $0xa4] ss:$16 sps:$4 sm:$0xff]   ;;  %v3754_v35 = vld [vmem:[#allocation10 + $0xa0] ss:$16 sps:$4 sm:$0xff]  }
  0x42   :  { %v3756_v36 = vld [vmem:[#allocation10 + $0xac] ss:$16 sps:$4 sm:$0xff]   ;;  %v3760_v37 = vld [vmem:[#allocation10 + $0xa8] ss:$16 sps:$4 sm:$0xff]   ;;  %v75_v38 = vld [vmem:[#allocation5 + $0x30] sm:$0xff]  ;;  %v101_v58 = vsub.s32 3, %v88_v56 }
  0x43   :  { %522 = vmatpush1.bf16.msra.mxu0 %v3695_v12  ;;  %563 = vmatpush1.bf16.msra.mxu1 %v3703_v14  ;;  %v76_v39 = vld [vmem:[#allocation5 + $0x38] sm:$0xff]  ;;  %v3766_v40 = vld [vmem:[#allocation10 + $0xc4] ss:$16 sps:$4 sm:$0xff]   ;;  %v3770_v41 = vld [vmem:[#allocation10 + $0xc0] ss:$16 sps:$4 sm:$0xff]   ;;  %v89_v59 = vsub.s32 0, %v88_v56 }
  0x44   :  { %523 = vmatprep.subr.bf16.mxu0 %v3711_v18  ;;  %564 = vmatprep.subr.bf16.mxu1 %v3716_v21  ;;  %v3772_v42 = vld [vmem:[#allocation10 + $0xcc] ss:$16 sps:$4 sm:$0xff]   ;;  %v3777_v43 = vld [vmem:[%s4281_s1] sm:$0xff]  ;;  %v80_v44 = vpack.c.bf16 %v76_v39, %v75_v38  ;;  %v3779_v45 = vld [vmem:[#allocation10 + $0xc8] ss:$16 sps:$4 sm:$0xff]   ;;  %v93_v61 = vsub.s32 1, %v88_v56 }
  0x45   :  { %v3781_v46 = vld [vmem:[#allocation10 + $0xe4] ss:$16 sps:$4 sm:$0xff]   ;;  %vm2954_vm1 = vcmp.gt.s32.totalorder %v3777_v43, 0  ;;  %v3785_v47 = vld [vmem:[#allocation10 + $0xec] ss:$16 sps:$4 sm:$0xff]   ;;  %vm2990_vm2 = vcmp.gt.s32.totalorder %v3777_v43, 1 }
  0x46   :  { %2912 = vmatmul.mubr.msk.bf16.gmra.mrb[4].mxu0 %vm127_vm0, %v78_v19  ;;  %2916 = vmatmul.mubr.msk.bf16.gmra.mrb[4].mxu1 %vm127_vm0, %v78_v19  ;;  %v631_v48 = vsel %vm2954_vm1, 1, %v4286_v0  ;;  %v3792_v49 = vld [vmem:[#allocation10 + $0xe0] ss:$16 sps:$4 sm:$0xff]   ;;  %v3796_v50 = vld [vmem:[#allocation10 + $0xe8] ss:$16 sps:$4 sm:$0xff]   ;;  %v951_v51 = vsel %vm2990_vm2, 1, %v4286_v0 }
  0x47   :  { %524 = vmatpush1.bf16.msra.mxu0 %v3714_v20  ;;  %192 = vmatprep.mubr.bf16.mxu0 %v4286_v0  ;;  %vm3098_vm3 = vcmp.gt.s32.totalorder %v3777_v43, 4  ;;  %vm3170_vm4 = vcmp.gt.s32.totalorder %v3777_v43, 6  ;;  %v85_v60 = vld [vmem:[%s4284_s4] sm:$0xf]  ;;  %vm3026_vm7 = vcmp.gt.s32.totalorder %v3777_v43, 2  ;;  %vm3062_vm8 = vcmp.gt.s32.totalorder %v3777_v43, 3 }
  0x48   :  { %565 = vmatpush1.bf16.msra.mxu1 %v3719_v22  ;;  %525 = vmatprep.subr.bf16.mxu0 %v3723_v23  ;;  %v1914_v52 = vsel %vm3098_vm3, 1, %v4286_v0  ;;  %v2556_v54 = vsel %vm3170_vm4, 1, %v4286_v0  ;;  %v3850_v62 = vrot.slane %v85_v60, %v97_v57  ;;  %v3856_v2 = vrot.slane %v85_v60, %v101_v58  ;;  %s3606_s4 = smov [#allocation11]  }
  0x49   :  { %566 = vmatprep.subr.bf16.mxu1 %v3726_v24  ;;  %265 = vmatprep.mubr.bf16.mxu1 %v4286_v0  ;;  %v90_v3 = vrot.slane %v85_v60, %v89_v59  ;;  %v94_v6 = vrot.slane %v85_v60, %v93_v61  ;;  %vm3134_vm9 = vcmp.gt.s32.totalorder %v3777_v43, 5  ;;  %vm3206_vm10 = vcmp.gt.s32.totalorder %v3777_v43, 7  ;;  %s2894_s8 = sshll.u32 %s3606_s4, 4  ;;  %s2895_s8 = int_to_ptr.vmem [resolvable:$true] %s2894_s8 }
  0x4a   :  { %633 = vperm.xlu0 %3223, %v631_v48   ;;  %s3569_s9 = scalar_lea.vmem %s2895_s8, 1024  ;;  %p3574_p11 = scmp.lt.s32.totalorder %s2895_s8, %s2895_s8 }
  0x4b   :  { %526 = vmatpush1.bf16.msra.mxu0 %v3730_v25  ;;  %p3570_p10 = scmp.ne.s32.totalorder %s2895_s8, %s3569_s9  ;;  %p3575_p12 = scmp.lt.s32.totalorder %s3569_s9, %s3569_s9 }
  0x4c   :  { %567 = vmatpush1.bf16.msra.mxu1 %v3736_v28  ;;  %527 = vmatprep.subr.bf16.mxu0 %v3738_v29 }
  0x4d   :  { %568 = vmatprep.subr.bf16.mxu1 %v3742_v30  ;;  %p3576_p13 = por %p3575_p12, %p3574_p11 }
  0x4e   :  { %2913 = vmatmul.mubr.msk.bf16.gmra.mrb[8].mxu0 %vm127_vm0, %v79_v31  ;;  %2917 = vmatmul.mubr.msk.bf16.gmra.mrb[8].mxu1 %vm127_vm0, %v79_v31 }
  0x4f   :  { %528 = vmatpush1.bf16.msra.mxu0 %v3745_v32  ;;  %202 = vmatprep.mubr.bf16.mxu0 %v4286_v0  ;;  %p3577_p0 = pnand %p3576_p13, %p3570_p10 }
  0x50   :  { %569 = vmatpush1.bf16.msra.mxu1 %v3747_v33  ;;  %529 = vmatprep.subr.bf16.mxu0 %v3751_v34 }
  0x51   :  { %570 = vmatprep.subr.bf16.mxu1 %v3756_v36  ;;  %275 = vmatprep.mubr.bf16.mxu1 %v4286_v0 }
  0x52   :  { %953 = vperm.xlu0 %3223, %v951_v51  }
  0x53   :  { %530 = vmatpush1.bf16.msra.mxu0 %v3754_v35 }
  0x54   :  { %571 = vmatpush1.bf16.msra.mxu1 %v3760_v37  ;;  %531 = vmatprep.subr.bf16.mxu0 %v3766_v40 }
  0x55   :  { %572 = vmatprep.subr.bf16.mxu1 %v3772_v42 }
  0x56   :  { %2914 = vmatmul.mubr.msk.bf16.gmra.mrb[12].mxu0 %vm127_vm0, %v80_v44  ;;  %2918 = vmatmul.mubr.msk.bf16.gmra.mrb[12].mxu1 %vm127_vm0, %v80_v44 }
  0x57   :  { %532 = vmatpush1.bf16.msra.mxu0 %v3770_v41  ;;  %551 = vmatprep.mubr.bf16.mxu0 %v4286_v0 }
  0x58   :  { %573 = vmatpush1.bf16.msra.mxu1 %v3779_v45  ;;  %533 = vmatprep.subr.bf16.mxu0 %v3781_v46 }
  0x59   :  { %574 = vmatprep.subr.bf16.mxu1 %v3785_v47  ;;  %592 = vmatprep.mubr.bf16.mxu1 %v4286_v0 }
  0x5a   :  { %1916 = vperm.xlu0 %3223, %v1914_v52  }
  0x5b   :  { %534 = vmatpush1.bf16.msra.mxu0 %v3792_v49 }
  0x5c   :  { %575 = vmatpush1.bf16.msra.mxu1 %v3796_v50  ;;  %838 = vmatprep.subr.bf16.mxu0 %v3688_v9 }
  0x5d   :  { %879 = vmatprep.subr.bf16.mxu1 %v3692_v11 }
  0x5e   :  { %552 = vmatmul.mubr.bf16.vlgmr.msra.gmra.mrb[16].mxu0 %v3605_v53  ;;  %2558 = vperm.xlu0 %3223, %v2556_v54  }
  0x5f   :  { %593 = vmatmul.mubr.bf16.vlgmr.msra.gmra.mrb[16].mxu1 %v3605_v53  ;;  %839 = vmatpush1.bf16.msra.mxu0 %v3686_v8 }
  0x60   :  { %880 = vmatpush1.bf16.msra.mxu1 %v3690_v10  ;;  %840 = vmatprep.subr.bf16.mxu0 %v3699_v13 }
  0x61   :  { %881 = vmatprep.subr.bf16.mxu1 %v3705_v15  ;;  %870 = vmatprep.mubr.bf16.mxu0 %v4286_v0 }
  0x62   :  { %911 = vmatprep.mubr.bf16.mxu1 %v4286_v0 }
  0x63   :  { %841 = vmatpush1.bf16.msra.mxu0 %v3695_v12 }
  0x64   :  { %882 = vmatpush1.bf16.msra.mxu1 %v3703_v14  ;;  %842 = vmatprep.subr.bf16.mxu0 %v3711_v18 }
  0x65   :  { %883 = vmatprep.subr.bf16.mxu1 %v3716_v21 }
  0x67   :  { %843 = vmatpush1.bf16.msra.mxu0 %v3714_v20 }
  0x68   :  { %884 = vmatpush1.bf16.msra.mxu1 %v3719_v22  ;;  %844 = vmatprep.subr.bf16.mxu0 %v3723_v23 }
  0x69   :  { %885 = vmatprep.subr.bf16.mxu1 %v3726_v24 }
  0x6b   :  { %845 = vmatpush1.bf16.msra.mxu0 %v3730_v25 }
  0x6c   :  { %886 = vmatpush1.bf16.msra.mxu1 %v3736_v28  ;;  %846 = vmatprep.subr.bf16.mxu0 %v3738_v29 }
  0x6d   :  { %887 = vmatprep.subr.bf16.mxu1 %v3742_v30 }
  0x6f   :  { %847 = vmatpush1.bf16.msra.mxu0 %v3745_v32 }
  0x70   :  { %888 = vmatpush1.bf16.msra.mxu1 %v3747_v33  ;;  %848 = vmatprep.subr.bf16.mxu0 %v3751_v34 }
  0x71   :  { %889 = vmatprep.subr.bf16.mxu1 %v3756_v36 }
  0x73   :  { %849 = vmatpush1.bf16.msra.mxu0 %v3754_v35 }
  0x74   :  { %890 = vmatpush1.bf16.msra.mxu1 %v3760_v37  ;;  %850 = vmatprep.subr.bf16.mxu0 %v3766_v40 }
  0x75   :  { %891 = vmatprep.subr.bf16.mxu1 %v3772_v42 }
  0x77   :  { %851 = vmatpush1.bf16.msra.mxu0 %v3770_v41 }
  0x78   :  { %892 = vmatpush1.bf16.msra.mxu1 %v3779_v45  ;;  %852 = vmatprep.subr.bf16.mxu0 %v3781_v46 }
  0x79   :  { %893 = vmatprep.subr.bf16.mxu1 %v3785_v47 }
  0x7b   :  { %853 = vmatpush1.bf16.msra.mxu0 %v3792_v49 }
  0x7c   :  { %894 = vmatpush1.bf16.msra.mxu1 %v3796_v50  ;;  %1159 = vmatprep.subr.bf16.mxu0 %v3688_v9 }
  0x7d   :  { %1200 = vmatprep.subr.bf16.mxu1 %v3692_v11 }
 0x111   :  { %v3852_v63 = vpop.f32.mrb[0].mxu0  ;;  %v3854_v1 = vpop.f32.mrb[0].mxu1 }
 0x112   :  { %v176_v4 = vpop.f32.mrb[1].mxu0  ;;  %v249_v5 = vpop.f32.mrb[1].mxu1 }
 0x113   :  { %v178_v7 = vpop.f32.mrb[2].mxu0  ;;  %v251_v9 = vpop.f32.mrb[2].mxu1 }
 0x114   :  { %v3858_v11 = vadd.f32 %v178_v7, %v90_v3  ;;  %v180_v16 = vpop.f32.mrb[3].mxu0  ;;  %v3861_v17 = vadd.f32 %v251_v9, %v3850_v62  ;;  %v253_v19 = vpop.f32.mrb[3].mxu1 }
 0x115   :  { %v3863_v26 = vadd.f32 %v180_v16, %v94_v6  ;;  %v3866_v27 = vadd.f32 %v253_v19, %v3856_v2 }
 0x119   :  { %v184_v31 = vpop.f32.mrb[4].mxu0  ;;  %v257_v38 = vpop.f32.mrb[4].mxu1 }
 0x11a   :  { %v3868_v39 = vadd.f32 %v184_v31, %v90_v3  ;;  %v186_v44 = vpop.f32.mrb[5].mxu0  ;;  %v3871_v48 = vadd.f32 %v257_v38, %v3850_v62  ;;  %v259_v51 = vpop.f32.mrb[5].mxu1 }
 0x11b   :  { %v3873_v52 = vadd.f32 %v186_v44, %v94_v6  ;;  %v188_v53 = vpop.f32.mrb[6].mxu0  ;;  %v3876_v54 = vadd.f32 %v259_v51, %v3856_v2  ;;  %v261_v55 = vpop.f32.mrb[6].mxu1 }
 0x11c   :  { %v3878_v56 = vadd.f32 %v188_v53, %v90_v3  ;;  %v190_v57 = vpop.f32.mrb[7].mxu0  ;;  %v3881_v58 = vadd.f32 %v261_v55, %v3850_v62  ;;  %v263_v59 = vpop.f32.mrb[7].mxu1 }
 0x11d   :  { %v3883_v60 = vadd.f32 %v190_v57, %v94_v6  ;;  %v3886_v61 = vadd.f32 %v263_v59, %v3856_v2 }
 0x11e   :  { %4288 = vst [vmem:[#allocation15_spill] sm:$0xff] %v3878_v56  ;;  %4289 = vst [vmem:[#allocation16_spill] sm:$0xff] %v3881_v58 }
 0x11f   :  { %4290 = vst [vmem:[#allocation17_spill] sm:$0xff] %v3883_v60  ;;  %4291 = vst [vmem:[#allocation18_spill] sm:$0xff] %v3886_v61 }
 0x121   :  { %v194_v7 = vpop.f32.mrb[8].mxu0  ;;  %v267_v9 = vpop.f32.mrb[8].mxu1 }
 0x122   :  { %v3888_v16 = vadd.f32 %v194_v7, %v90_v3  ;;  %v196_v19 = vpop.f32.mrb[9].mxu0  ;;  %v3891_v31 = vadd.f32 %v267_v9, %v3850_v62  ;;  %v269_v38 = vpop.f32.mrb[9].mxu1 }
 0x123   :  { %v3893_v44 = vadd.f32 %v196_v19, %v94_v6  ;;  %v198_v51 = vpop.f32.mrb[10].mxu0  ;;  %v3896_v53 = vadd.f32 %v269_v38, %v3856_v2  ;;  %v271_v55 = vpop.f32.mrb[10].mxu1 }
 0x124   :  { %4292 = vst [vmem:[#allocation19_spill] sm:$0xff] %v3888_v16  ;;  %4293 = vst [vmem:[#allocation20_spill] sm:$0xff] %v3891_v31  ;;  %v3898_v57 = vadd.f32 %v198_v51, %v90_v3  ;;  %v200_v59 = vpop.f32.mrb[11].mxu0  ;;  %v3901_v0 = vadd.f32 %v271_v55, %v3850_v62  ;;  %v273_v7 = vpop.f32.mrb[11].mxu1 }
 0x125   :  { %4294 = vst [vmem:[#allocation21_spill] sm:$0xff] %v3893_v44  ;;  %4295 = vst [vmem:[#allocation22_spill] sm:$0xff] %v3896_v53  ;;  %v3903_v16 = vadd.f32 %v200_v59, %v94_v6  ;;  %v3906_v9 = vadd.f32 %v273_v7, %v3856_v2 }
 0x126   :  { %4296 = vst [vmem:[#allocation23_spill] sm:$0xff] %v3898_v57  ;;  %4297 = vst [vmem:[#allocation24_spill] sm:$0xff] %v3901_v0 }
 0x127   :  { %4298 = vst [vmem:[#allocation25_spill] sm:$0xff] %v3903_v16  ;;  %4299 = vst [vmem:[#allocation26_spill] sm:$0xff] %v3906_v9 }
 0x129   :  { %v204_v31 = vpop.f32.mrb[12].mxu0  ;;  %v277_v19 = vpop.f32.mrb[12].mxu1 }
 0x12a   :  { %v3908_v44 = vadd.f32 %v204_v31, %v90_v3  ;;  %v206_v61 = vpop.f32.mrb[13].mxu0  ;;  %v3911_v38 = vadd.f32 %v277_v19, %v3850_v62  ;;  %v279_v51 = vpop.f32.mrb[13].mxu1 }
 0x12b   :  { %v3913_v57 = vadd.f32 %v206_v61, %v94_v6  ;;  %v208_v53 = vpop.f32.mrb[14].mxu0  ;;  %v3916_v55 = vadd.f32 %v279_v51, %v3856_v2  ;;  %v281_v59 = vpop.f32.mrb[14].mxu1  ;;  %v175_v61 = vadd.f32 %v3852_v63, %v90_v3  ;;  %v248_v51 = vadd.f32 %v3854_v1, %v3850_v62 }
 0x12c   :  { %4300 = vst [vmem:[#allocation27_spill] sm:$0xff] %v3908_v44  ;;  %4301 = vst [vmem:[#allocation28_spill] sm:$0xff] %v3911_v38  ;;  %v3918_v16 = vadd.f32 %v208_v53, %v90_v3  ;;  %v210_v7 = vpop.f32.mrb[15].mxu0  ;;  %v3921_v9 = vadd.f32 %v281_v59, %v3850_v62  ;;  %v283_v31 = vpop.f32.mrb[15].mxu1  ;;  %v250_v53 = vadd.f32 %v249_v5, %v3856_v2 }
 0x12d   :  { %4302 = vst [vmem:[#allocation29_spill] sm:$0xff] %v3913_v57  ;;  %4303 = vst [vmem:[#allocation30_spill] sm:$0xff] %v3916_v55  ;;  %v3923_v44 = vadd.f32 %v210_v7, %v94_v6  ;;  %v3926_v19 = vadd.f32 %v283_v31, %v3856_v2  ;;  %v177_v57 = vadd.f32 %v176_v4, %v94_v6 }
 0x12e   :  { %4304 = vst [vmem:[#allocation31_spill] sm:$0xff] %v3918_v16  ;;  %4305 = vst [vmem:[#allocation32_spill] sm:$0xff] %v3921_v9 }
 0x12f   :  { %4306 = vst [vmem:[#allocation33_spill] sm:$0xff] %v3923_v44  ;;  %4307 = vst [vmem:[#allocation34_spill] sm:$0xff] %v3926_v19 }
 0x131   :  { %v553_v55 = vpop.f32.mrb[16].mxu0 }
 0x132   :  { %v601_v16 = vadd.f32 %v553_v55, %v175_v61  ;;  %v594_v38 = vpop.f32.mrb[16].mxu1  ;;  %v555_v0 = vpop.f32.mrb[17].mxu0 }
 0x133   :  { %v603_v59 = vadd.f32 %v594_v38, %v248_v51  ;;  %v602_v9 = vadd.f32 %v555_v0, %v177_v57  ;;  %v596_v60 = vpop.f32.mrb[17].mxu1  ;;  %v557_v7 = vpop.f32.mrb[18].mxu0  ;;  %v4308_v51 = vmov 0  }
 0x134   :  { %v2951_v44 = vmul.f32 -1.442695, %v601_v16  ;;  %v604_v58 = vadd.f32 %v596_v60, %v250_v53  ;;  %v558_v31 = vpop.f32.mrb[19].mxu0  ;;  %v598_v19 = vpop.f32.mrb[18].mxu1 }
 0x135   :  { %v2952_v56 = vmul.f32 -1.442695, %v602_v9  ;;  %v599_v63 = vpop.f32.mrb[19].mxu1 }
 0x136   :  { %3375 = vpow2.f32 %v2951_v44  ;;  %v2953_v3 = vmul.f32 -1.442695, %v604_v58 }
 0x137   :  { %3377 = vpow2.f32 %v2952_v56  ;;  %v3935_v56 = vpop.permute.xlu0 %633 }
 0x138   :  { %3379 = vpow2.f32 %v2953_v3  ;;  %vm635_vm5 = vcmp.eq.s32.totalorder %v3935_v56, 1  ;;  %v4002_v3 = vld [vmem:[#allocation10 + $0x4] ss:$16 sps:$4 sm:$0xff]   ;;  %v4038_v56 = vld [vmem:[#allocation10 + $0x6c] ss:$16 sps:$4 sm:$0xff]  }
 0x139   :  { %3381 = vtanh.f32 %v603_v59  ;;  %vm3207_vm6 = vmpackc.low %vm635_vm5, %vm635_vm5 }
 0x140   :  { %v3376_v62 = vpop.eup %3375 }
 0x141   :  { %v3378_v1 = vpop.eup %3377  ;;  %v608_v4 = vadd.f32 1.0, %v3376_v62  ;;  %v4004_v62 = vld [vmem:[#allocation10 + $0xc] ss:$16 sps:$4 sm:$0xff]  }
 0x142   :  { %v614_v2 = vadd.f32 1.0, %v3378_v1  ;;  %v3380_v0 = vpop.eup %3379  ;;  %v4006_v1 = vld [vmem:[#allocation10] ss:$16 sps:$4 sm:$0xff]  }
 0x143   :  { %3383 = vrcp.f32 %v608_v4  ;;  %v3382_v5 = vpop.eup %3381  ;;  %v621_v60 = vadd.f32 1.0, %v3380_v0  ;;  %v4008_v4 = vld [vmem:[#allocation10 + $0x8] ss:$16 sps:$4 sm:$0xff]   ;;  %v4016_v0 = vld [vmem:[#allocation10 + $0x24] ss:$16 sps:$4 sm:$0xff]  }
 0x144   :  { %3385 = vrcp.f32 %v614_v2  ;;  %v4014_v2 = vld [vmem:[#allocation10 + $0x20] ss:$16 sps:$4 sm:$0xff]  }
 0x145   :  { %3387 = vrcp.f32 %v621_v60  ;;  %v4025_v60 = vld [vmem:[#allocation10 + $0x4c] ss:$16 sps:$4 sm:$0xff]  }
 0x14d   :  { %v3384_v6 = vpop.eup %3383 }
 0x14e   :  { %v3386_v16 = vpop.eup %3385  ;;  %v625_v57 = vmul.f32 %v3384_v6, %v3382_v5  ;;  %v4018_v5 = vld [vmem:[#allocation10 + $0x28] ss:$16 sps:$4 sm:$0xff]   ;;  %v4020_v6 = vld [vmem:[#allocation10 + $0x2c] ss:$16 sps:$4 sm:$0xff]  }
 0x14f   :  { %v624_v38 = vmul.f32 0.0, %v3386_v16  ;;  %v3388_v58 = vpop.eup %3387  ;;  %v4022_v16 = vld [vmem:[#allocation10 + $0x44] ss:$16 sps:$4 sm:$0xff]  }
 0x151   :  { %v3932_v9 = vadd.f32 %v625_v57, %v624_v38  ;;  %v4030_v57 = vld [vmem:[#allocation10 + $0x40] ss:$16 sps:$4 sm:$0xff]   ;;  %v4032_v38 = vld [vmem:[#allocation10 + $0x48] ss:$16 sps:$4 sm:$0xff]  }
 0x153   :  { %3389 = vtanh.f32 %v3932_v9 }
 0x15d   :  { %v3390_v44 = vpop.eup %3389 }
 0x15e   :  { %v628_v55 = vmul.f32 %v3390_v44, %v3388_v58  ;;  %v4042_v58 = vld [vmem:[#allocation10 + $0x60] ss:$16 sps:$4 sm:$0xff]   ;;  %v4044_v44 = vld [vmem:[#allocation10 + $0x68] ss:$16 sps:$4 sm:$0xff]  }
 0x160   :  { %v3943_v19 = vsel %vm635_vm5, %v628_v55, 0.0  ;;  %v3208_v61 = vpack.c.bf16 %v628_v55, %v628_v55  ;;  %v4050_v55 = vld [vmem:[#allocation10 + $0x84] ss:$16 sps:$4 sm:$0xff]  }
 0x161   :  { %639 = vst [vmem:[#allocation11] sm:$0xff] %v3943_v19 }
 0x162   :  { %3209 = vmatmul.mubr.msk.bf16.vlgmr.msra.gmra.mrb[20].mxu0 %vm3207_vm6, %v3208_v61  ;;  %3212 = vmatmul.mubr.msk.bf16.vlgmr.msra.gmra.mrb[20].mxu1 %vm3207_vm6, %v3208_v61  ;;  %v4054_v61 = vld [vmem:[#allocation10 + $0x80] ss:$16 sps:$4 sm:$0xff]  }
 0x163   :  { %1160 = vmatpush1.bf16.msra.mxu0 %v3686_v8  ;;  %1201 = vmatpush1.bf16.msra.mxu1 %v3690_v10  ;;  %v1272_v8 = vsel %vm3026_vm7, 1, %v4308_v51  ;;  %v1593_v10 = vsel %vm3062_vm8, 1, %v4308_v51 }
 0x164   :  { %1161 = vmatprep.subr.bf16.mxu0 %v3699_v13  ;;  %1202 = vmatprep.subr.bf16.mxu1 %v3705_v15  ;;  %v2877_v13 = vsel %vm3206_vm10, 1, %v4308_v51 }
 0x165   :  { %1191 = vmatprep.mubr.bf16.mxu0 %v4308_v51  ;;  %1232 = vmatprep.mubr.bf16.mxu1 %v4308_v51 }
 0x166   :  { %1274 = vperm.xlu1 %3224, %v1272_v8   ;;  %v4056_v8 = vld [vmem:[#allocation10 + $0x88] ss:$16 sps:$4 sm:$0xff]  }
 0x167   :  { %1162 = vmatpush1.bf16.msra.mxu0 %v3695_v12  ;;  %1203 = vmatpush1.bf16.msra.mxu1 %v3703_v14  ;;  %v2235_v12 = vsel %vm3134_vm9, 1, %v4308_v51 }
 0x168   :  { %1163 = vmatprep.subr.bf16.mxu0 %v3711_v18  ;;  %1204 = vmatprep.subr.bf16.mxu1 %v3716_v21 }
 0x16a   :  { %1595 = vperm.xlu1 %3224, %v1593_v10   ;;  %v4062_v10 = vld [vmem:[#allocation10 + $0xa4] ss:$16 sps:$4 sm:$0xff]  }
 0x16b   :  { %1164 = vmatpush1.bf16.msra.mxu0 %v3714_v20  ;;  %1205 = vmatpush1.bf16.msra.mxu1 %v3719_v22 }
 0x16c   :  { %1165 = vmatprep.subr.bf16.mxu0 %v3723_v23  ;;  %1206 = vmatprep.subr.bf16.mxu1 %v3726_v24 }
 0x16e   :  { %2237 = vperm.xlu1 %3224, %v2235_v12   ;;  %v4064_v12 = vld [vmem:[#allocation10 + $0xac] ss:$16 sps:$4 sm:$0xff]  }
 0x16f   :  { %1166 = vmatpush1.bf16.msra.mxu0 %v3730_v25  ;;  %1207 = vmatpush1.bf16.msra.mxu1 %v3736_v28 }
 0x170   :  { %1167 = vmatprep.subr.bf16.mxu0 %v3738_v29  ;;  %1208 = vmatprep.subr.bf16.mxu1 %v3742_v30 }
 0x172   :  { %2879 = vperm.xlu1 %3224, %v2877_v13   ;;  %v4066_v13 = vld [vmem:[#allocation10 + $0xa0] ss:$16 sps:$4 sm:$0xff]  }
 0x173   :  { %1168 = vmatpush1.bf16.msra.mxu0 %v3745_v32  ;;  %1209 = vmatpush1.bf16.msra.mxu1 %v3747_v33 }
 0x174   :  { %1169 = vmatprep.subr.bf16.mxu0 %v3751_v34  ;;  %1210 = vmatprep.subr.bf16.mxu1 %v3756_v36 }
 0x177   :  { %1170 = vmatpush1.bf16.msra.mxu0 %v3754_v35  ;;  %1211 = vmatpush1.bf16.msra.mxu1 %v3760_v37 }
 0x178   :  { %1171 = vmatprep.subr.bf16.mxu0 %v3766_v40  ;;  %1212 = vmatprep.subr.bf16.mxu1 %v3772_v42 }
 0x17b   :  { %1172 = vmatpush1.bf16.msra.mxu0 %v3770_v41  ;;  %1213 = vmatpush1.bf16.msra.mxu1 %v3779_v45 }
 0x17c   :  { %1173 = vmatprep.subr.bf16.mxu0 %v3781_v46  ;;  %1214 = vmatprep.subr.bf16.mxu1 %v3785_v47  ;;  %v636_v46 = vsel %vm635_vm5, %v3932_v9, 0.0  ;;  %v4036_v9 = vld [vmem:[#allocation10 + $0x64] ss:$16 sps:$4 sm:$0xff]  }
 0x17f   :  { %1174 = vmatpush1.bf16.msra.mxu0 %v3792_v49  ;;  %1215 = vmatpush1.bf16.msra.mxu1 %v3796_v50 }
 0x180   :  { %1480 = vmatprep.subr.bf16.mxu0 %v4002_v3  ;;  %1521 = vmatprep.subr.bf16.mxu1 %v4004_v62 }
 0x235   :  { %v872_v14 = vpop.f32.mrb[20].mxu0  ;;  %v913_v15 = vpop.f32.mrb[20].mxu1 }
 0x236   :  { %v920_v18 = vadd.f32 %v872_v14, %v3858_v11  ;;  %v922_v20 = vadd.f32 %v913_v15, %v3861_v17  ;;  %v874_v21 = vpop.f32.mrb[21].mxu0  ;;  %v915_v22 = vpop.f32.mrb[21].mxu1  ;;  %v4068_v14 = vld [vmem:[#allocation10 + $0xa8] ss:$16 sps:$4 sm:$0xff]   ;;  %v4074_v15 = vld [vmem:[#allocation10 + $0xc4] ss:$16 sps:$4 sm:$0xff]  }
 0x237   :  { %v921_v23 = vadd.f32 %v874_v21, %v3863_v26  ;;  %v923_v24 = vadd.f32 %v915_v22, %v3866_v27  ;;  %v876_v25 = vpop.f32.mrb[22].mxu0  ;;  %v917_v28 = vpop.f32.mrb[22].mxu1  ;;  %v4080_v21 = vld [vmem:[#allocation10 + $0xc8] ss:$16 sps:$4 sm:$0xff]   ;;  %v4086_v22 = vld [vmem:[#allocation10 + $0xe4] ss:$16 sps:$4 sm:$0xff]  }
 0x238   :  { %v2987_v29 = vmul.f32 -1.442695, %v920_v18  ;;  %v877_v30 = vpop.f32.mrb[23].mxu0  ;;  %v918_v32 = vpop.f32.mrb[23].mxu1  ;;  %v4076_v18 = vld [vmem:[#allocation10 + $0xcc] ss:$16 sps:$4 sm:$0xff]  }
 0x239   :  { %v2988_v33 = vmul.f32 -1.442695, %v921_v23  ;;  %v2989_v34 = vmul.f32 -1.442695, %v923_v24  ;;  %v954_v11 = vpop.permute.xlu0 %953  ;;  %v4088_v23 = vld [vmem:[#allocation10 + $0xec] ss:$16 sps:$4 sm:$0xff]  }
 0x23a   :  { %3391 = vpow2.f32 %v2987_v29  ;;  %vm955_vm11 = vcmp.eq.s32.totalorder %v954_v11, 1  ;;  %v4090_v24 = vld [vmem:[#allocation10 + $0xe0] ss:$16 sps:$4 sm:$0xff]   ;;  %v4092_v25 = vld [vmem:[#allocation10 + $0xe8] ss:$16 sps:$4 sm:$0xff]   ;;  %v1275_v11 = vpop.permute.xlu1 %1274 }
 0x23b   :  { %3393 = vpow2.f32 %v2988_v33  ;;  %vm1276_vm12 = vcmp.eq.s32.totalorder %v1275_v11, 1 }
 0x23c   :  { %3395 = vpow2.f32 %v2989_v34 }
 0x23d   :  { %3397 = vtanh.f32 %v922_v20  ;;  %v4078_v20 = vld [vmem:[#allocation10 + $0xc0] ss:$16 sps:$4 sm:$0xff]  }
 0x244   :  { %v3392_v35 = vpop.eup %3391 }
 0x245   :  { %v3394_v36 = vpop.eup %3393  ;;  %v927_v37 = vadd.f32 1.0, %v3392_v35 }
 0x246   :  { %v933_v40 = vadd.f32 1.0, %v3394_v36  ;;  %v3396_v41 = vpop.eup %3395 }
 0x247   :  { %3399 = vrcp.f32 %v927_v37  ;;  %v3398_v42 = vpop.eup %3397  ;;  %v940_v49 = vadd.f32 1.0, %v3396_v41 }
 0x248   :  { %3401 = vrcp.f32 %v933_v40 }
 0x249   :  { %3403 = vrcp.f32 %v940_v49 }
 0x251   :  { %v3400_v43 = vpop.eup %3399 }
 0x252   :  { %v3402_v45 = vpop.eup %3401  ;;  %v944_v47 = vmul.f32 %v3400_v43, %v3398_v42 }
 0x253   :  { %v943_v50 = vmul.f32 %v3402_v45, %v636_v46  ;;  %v3404_v27 = vpop.eup %3403 }
 0x255   :  { %v945_v17 = vadd.f32 %v944_v47, %v943_v50 }
 0x257   :  { %3405 = vtanh.f32 %v945_v17  ;;  %v3993_v26 = vsel %vm955_vm11, %v945_v17, %v636_v46 }
 0x261   :  { %v3406_v53 = vpop.eup %3405 }
 0x262   :  { %v947_v59 = vmul.f32 %v3406_v53, %v3404_v27 }
 0x264   :  { %v3996_v7 = vsel %vm955_vm11, %v947_v59, %v3943_v19  ;;  %v958_v31 = vsel %vm955_vm11, %v947_v59, 0.0  ;;  %v4052_v19 = vld [vmem:[#allocation10 + $0x8c] ss:$16 sps:$4 sm:$0xff]  }
 0x265   :  { %960 = vst [vmem:[#allocation11 + $0x8] sm:$0xff] %v958_v31  ;;  %v966_v63 = vpack.c.bf16 %v3996_v7, %v3996_v7 }
 0x267   :  { %1192 = vmatmul.mubr.bf16.vlgmr.msra.gmra.mrb[24].mxu0 %v966_v63  ;;  %1233 = vmatmul.mubr.bf16.vlgmr.msra.gmra.mrb[24].mxu1 %v966_v63 }
 0x268   :  { %1512 = vmatprep.mubr.bf16.mxu0 %v4308_v51  ;;  %1553 = vmatprep.mubr.bf16.mxu1 %v4308_v51 }
 0x269   :  { %1481 = vmatpush1.bf16.msra.mxu0 %v4006_v1  ;;  %1522 = vmatpush1.bf16.msra.mxu1 %v4008_v4 }
 0x26a   :  { %1482 = vmatprep.subr.bf16.mxu0 %v4016_v0  ;;  %1523 = vmatprep.subr.bf16.mxu1 %v4020_v6 }
 0x26d   :  { %1483 = vmatpush1.bf16.msra.mxu0 %v4014_v2  ;;  %1524 = vmatpush1.bf16.msra.mxu1 %v4018_v5 }
 0x26e   :  { %1484 = vmatprep.subr.bf16.mxu0 %v4022_v16  ;;  %1525 = vmatprep.subr.bf16.mxu1 %v4025_v60 }
 0x271   :  { %1485 = vmatpush1.bf16.msra.mxu0 %v4030_v57  ;;  %1526 = vmatpush1.bf16.msra.mxu1 %v4032_v38 }
 0x272   :  { %1486 = vmatprep.subr.bf16.mxu0 %v4036_v9  ;;  %1527 = vmatprep.subr.bf16.mxu1 %v4038_v56 }
 0x275   :  { %1487 = vmatpush1.bf16.msra.mxu0 %v4042_v58  ;;  %1528 = vmatpush1.bf16.msra.mxu1 %v4044_v44 }
 0x276   :  { %1488 = vmatprep.subr.bf16.mxu0 %v4050_v55  ;;  %1529 = vmatprep.subr.bf16.mxu1 %v4052_v19 }
 0x279   :  { %1489 = vmatpush1.bf16.msra.mxu0 %v4054_v61  ;;  %1530 = vmatpush1.bf16.msra.mxu1 %v4056_v8 }
 0x27a   :  { %1490 = vmatprep.subr.bf16.mxu0 %v4062_v10  ;;  %1531 = vmatprep.subr.bf16.mxu1 %v4064_v12 }
 0x27d   :  { %1491 = vmatpush1.bf16.msra.mxu0 %v4066_v13  ;;  %1532 = vmatpush1.bf16.msra.mxu1 %v4068_v14 }
 0x27e   :  { %1492 = vmatprep.subr.bf16.mxu0 %v4074_v15  ;;  %1533 = vmatprep.subr.bf16.mxu1 %v4076_v18 }
 0x281   :  { %1493 = vmatpush1.bf16.msra.mxu0 %v4078_v20  ;;  %1534 = vmatpush1.bf16.msra.mxu1 %v4080_v21 }
 0x282   :  { %1494 = vmatprep.subr.bf16.mxu0 %v4086_v22  ;;  %1535 = vmatprep.subr.bf16.mxu1 %v4088_v23 }
 0x285   :  { %1495 = vmatpush1.bf16.msra.mxu0 %v4090_v24  ;;  %1536 = vmatpush1.bf16.msra.mxu1 %v4092_v25 }
 0x286   :  { %1801 = vmatprep.subr.bf16.mxu0 %v4002_v3  ;;  %1842 = vmatprep.subr.bf16.mxu1 %v4004_v62 }
 0x33a   :  { %v1193_v28 = vpop.f32.mrb[24].mxu0  ;;  %v1234_v29 = vpop.f32.mrb[24].mxu1 }
 0x33b   :  { %v1241_v30 = vadd.f32 %v1193_v28, %v3868_v39  ;;  %v1243_v32 = vadd.f32 %v1234_v29, %v3871_v48  ;;  %v1195_v33 = vpop.f32.mrb[25].mxu0  ;;  %v1236_v34 = vpop.f32.mrb[25].mxu1 }
 0x33c   :  { %v1242_v35 = vadd.f32 %v1195_v33, %v3873_v52  ;;  %v1244_v36 = vadd.f32 %v1236_v34, %v3876_v54  ;;  %v1197_v37 = vpop.f32.mrb[26].mxu0  ;;  %v1238_v40 = vpop.f32.mrb[26].mxu1 }
 0x33d   :  { %v3023_v41 = vmul.f32 -1.442695, %v1241_v30  ;;  %v1198_v42 = vpop.f32.mrb[27].mxu0  ;;  %v1239_v43 = vpop.f32.mrb[27].mxu1  ;;  %v4310_v37 = vld [vmem:[#allocation16_spill] sm:$0xff] }
 0x33e   :  { %v3024_v45 = vmul.f32 -1.442695, %v1242_v35  ;;  %v3025_v46 = vmul.f32 -1.442695, %v1244_v36  ;;  %v4309_v35 = vld [vmem:[#allocation15_spill] sm:$0xff]  ;;  %v4311_v43 = vld [vmem:[#allocation17_spill] sm:$0xff] }
 0x33f   :  { %3407 = vpow2.f32 %v3023_v41 }
 0x340   :  { %3409 = vpow2.f32 %v3024_v45 }
 0x341   :  { %3411 = vpow2.f32 %v3025_v46  ;;  %v4312_v46 = vld [vmem:[#allocation18_spill] sm:$0xff] }
 0x342   :  { %3413 = vtanh.f32 %v1243_v32 }
 0x349   :  { %v3408_v47 = vpop.eup %3407 }
 0x34a   :  { %v3410_v49 = vpop.eup %3409  ;;  %v1248_v39 = vadd.f32 1.0, %v3408_v47 }
 0x34b   :  { %v1254_v48 = vadd.f32 1.0, %v3410_v49  ;;  %v3412_v52 = vpop.eup %3411 }
 0x34c   :  { %3415 = vrcp.f32 %v1248_v39  ;;  %v3414_v50 = vpop.eup %3413  ;;  %v1261_v27 = vadd.f32 1.0, %v3412_v52 }
 0x34d   :  { %3417 = vrcp.f32 %v1254_v48 }
 0x34e   :  { %3419 = vrcp.f32 %v1261_v27 }
 0x356   :  { %v3416_v54 = vpop.eup %3415 }
 0x357   :  { %v3418_v17 = vpop.eup %3417  ;;  %v1265_v53 = vmul.f32 %v3416_v54, %v3414_v50 }
 0x358   :  { %v1264_v59 = vmul.f32 %v3418_v17, %v3993_v26  ;;  %v3420_v28 = vpop.eup %3419 }
 0x35a   :  { %v1266_v31 = vadd.f32 %v1265_v53, %v1264_v59 }
 0x35c   :  { %3421 = vtanh.f32 %v1266_v31  ;;  %v4106_v63 = vsel %vm1276_vm12, %v1266_v31, %v3993_v26 }
 0x366   :  { %v3422_v29 = vpop.eup %3421 }
 0x367   :  { %v1268_v30 = vmul.f32 %v3422_v29, %v3420_v28 }
 0x369   :  { %v4109_v32 = vsel %vm1276_vm12, %v1268_v30, %v3996_v7  ;;  %v1279_v33 = vsel %vm1276_vm12, %v1268_v30, 0.0 }
 0x36a   :  { %1281 = vst [vmem:[#allocation11 + $0x10] sm:$0xff] %v1279_v33  ;;  %v1287_v34 = vpack.c.bf16 %v4109_v32, %v4109_v32 }
 0x36c   :  { %1513 = vmatmul.mubr.bf16.vlgmr.msra.gmra.mrb[28].mxu0 %v1287_v34  ;;  %1554 = vmatmul.mubr.bf16.vlgmr.msra.gmra.mrb[28].mxu1 %v1287_v34 }
 0x36d   :  { %1802 = vmatpush1.bf16.msra.mxu0 %v4006_v1  ;;  %1843 = vmatpush1.bf16.msra.mxu1 %v4008_v4 }
 0x36e   :  { %1803 = vmatprep.subr.bf16.mxu0 %v4016_v0  ;;  %1844 = vmatprep.subr.bf16.mxu1 %v4020_v6 }
 0x36f   :  { %1833 = vmatprep.mubr.bf16.mxu0 %v4308_v51  ;;  %1874 = vmatprep.mubr.bf16.mxu1 %v4308_v51 }
 0x371   :  { %1804 = vmatpush1.bf16.msra.mxu0 %v4014_v2  ;;  %1845 = vmatpush1.bf16.msra.mxu1 %v4018_v5 }
 0x372   :  { %1805 = vmatprep.subr.bf16.mxu0 %v4022_v16  ;;  %1846 = vmatprep.subr.bf16.mxu1 %v4025_v60 }
 0x375   :  { %1806 = vmatpush1.bf16.msra.mxu0 %v4030_v57  ;;  %1847 = vmatpush1.bf16.msra.mxu1 %v4032_v38 }
 0x376   :  { %1807 = vmatprep.subr.bf16.mxu0 %v4036_v9  ;;  %1848 = vmatprep.subr.bf16.mxu1 %v4038_v56 }
 0x379   :  { %1808 = vmatpush1.bf16.msra.mxu0 %v4042_v58  ;;  %1849 = vmatpush1.bf16.msra.mxu1 %v4044_v44 }
 0x37a   :  { %1809 = vmatprep.subr.bf16.mxu0 %v4050_v55  ;;  %1850 = vmatprep.subr.bf16.mxu1 %v4052_v19 }
 0x37d   :  { %1810 = vmatpush1.bf16.msra.mxu0 %v4054_v61  ;;  %1851 = vmatpush1.bf16.msra.mxu1 %v4056_v8 }
 0x37e   :  { %1811 = vmatprep.subr.bf16.mxu0 %v4062_v10  ;;  %1852 = vmatprep.subr.bf16.mxu1 %v4064_v12 }
 0x381   :  { %1812 = vmatpush1.bf16.msra.mxu0 %v4066_v13  ;;  %1853 = vmatpush1.bf16.msra.mxu1 %v4068_v14 }
 0x382   :  { %1813 = vmatprep.subr.bf16.mxu0 %v4074_v15  ;;  %1854 = vmatprep.subr.bf16.mxu1 %v4076_v18 }
 0x385   :  { %1814 = vmatpush1.bf16.msra.mxu0 %v4078_v20  ;;  %1855 = vmatpush1.bf16.msra.mxu1 %v4080_v21 }
 0x386   :  { %1815 = vmatprep.subr.bf16.mxu0 %v4086_v22  ;;  %1856 = vmatprep.subr.bf16.mxu1 %v4088_v23 }
 0x389   :  { %1816 = vmatpush1.bf16.msra.mxu0 %v4090_v24  ;;  %1857 = vmatpush1.bf16.msra.mxu1 %v4092_v25 }
 0x38a   :  { %2122 = vmatprep.subr.bf16.mxu0 %v4002_v3  ;;  %2163 = vmatprep.subr.bf16.mxu1 %v4004_v62 }
 0x43f   :  { %v1514_v26 = vpop.f32.mrb[28].mxu0  ;;  %v1555_v7 = vpop.f32.mrb[28].mxu1 }
 0x440   :  { %v1562_v36 = vadd.f32 %v1514_v26, %v4309_v35  ;;  %v1564_v40 = vadd.f32 %v1555_v7, %v4310_v37  ;;  %v1516_v41 = vpop.f32.mrb[29].mxu0  ;;  %v1557_v42 = vpop.f32.mrb[29].mxu1 }
 0x441   :  { %v1563_v45 = vadd.f32 %v1516_v41, %v4311_v43  ;;  %v1565_v47 = vadd.f32 %v1557_v42, %v4312_v46  ;;  %v1518_v49 = vpop.f32.mrb[30].mxu0  ;;  %v1559_v39 = vpop.f32.mrb[30].mxu1  ;;  %v4313_v46 = vld [vmem:[#allocation19_spill] sm:$0xff] }
 0x442   :  { %v3059_v48 = vmul.f32 -1.442695, %v1562_v36  ;;  %v1519_v52 = vpop.f32.mrb[31].mxu0  ;;  %v1560_v50 = vpop.f32.mrb[31].mxu1  ;;  %v4314_v49 = vld [vmem:[#allocation20_spill] sm:$0xff] }
 0x443   :  { %v3060_v54 = vmul.f32 -1.442695, %v1563_v45  ;;  %v3061_v11 = vmul.f32 -1.442695, %v1565_v47  ;;  %v1596_v7 = vpop.permute.xlu1 %1595  ;;  %v4315_v50 = vld [vmem:[#allocation21_spill] sm:$0xff] }
 0x444   :  { %3423 = vpow2.f32 %v3059_v48  ;;  %vm1597_vm13 = vcmp.eq.s32.totalorder %v1596_v7, 1 }
 0x445   :  { %3425 = vpow2.f32 %v3060_v54 }
 0x446   :  { %3427 = vpow2.f32 %v3061_v11  ;;  %v4316_v11 = vld [vmem:[#allocation22_spill] sm:$0xff] }
 0x447   :  { %3429 = vtanh.f32 %v1564_v40 }
 0x44e   :  { %v3424_v17 = vpop.eup %3423 }
 0x44f   :  { %v3426_v27 = vpop.eup %3425  ;;  %v1569_v53 = vadd.f32 1.0, %v3424_v17 }
 0x450   :  { %v1575_v59 = vadd.f32 1.0, %v3426_v27  ;;  %v3428_v31 = vpop.eup %3427 }
 0x451   :  { %3431 = vrcp.f32 %v1569_v53  ;;  %v3430_v28 = vpop.eup %3429  ;;  %v1582_v34 = vadd.f32 1.0, %v3428_v31 }
 0x452   :  { %3433 = vrcp.f32 %v1575_v59 }
 0x453   :  { %3435 = vrcp.f32 %v1582_v34 }
 0x45b   :  { %v3432_v29 = vpop.eup %3431 }
 0x45c   :  { %v3434_v30 = vpop.eup %3433  ;;  %v1586_v33 = vmul.f32 %v3432_v29, %v3430_v28 }
 0x45d   :  { %v1585_v26 = vmul.f32 %v3434_v30, %v4106_v63  ;;  %v3436_v37 = vpop.eup %3435 }
 0x45f   :  { %v1587_v35 = vadd.f32 %v1586_v33, %v1585_v26 }
 0x461   :  { %3437 = vtanh.f32 %v1587_v35  ;;  %v4153_v36 = vsel %vm1597_vm13, %v1587_v35, %v4106_v63 }
 0x46b   :  { %v3438_v40 = vpop.eup %3437 }
 0x46c   :  { %v1589_v41 = vmul.f32 %v3438_v40, %v3436_v37 }
 0x46e   :  { %v4156_v42 = vsel %vm1597_vm13, %v1589_v41, %v4109_v32  ;;  %v1600_v43 = vsel %vm1597_vm13, %v1589_v41, 0.0 }
 0x46f   :  { %1602 = vst [vmem:[#allocation11 + $0x18] sm:$0xff] %v1600_v43  ;;  %v1608_v45 = vpack.c.bf16 %v4156_v42, %v4156_v42 }
 0x471   :  { %1834 = vmatmul.mubr.bf16.vlgmr.msra.gmra.mrb[32].mxu0 %v1608_v45  ;;  %1875 = vmatmul.mubr.bf16.vlgmr.msra.gmra.mrb[32].mxu1 %v1608_v45  ;;  %v1917_v45 = vpop.permute.xlu0 %1916 }
 0x472   :  { %2123 = vmatpush1.bf16.msra.mxu0 %v4006_v1  ;;  %2164 = vmatpush1.bf16.msra.mxu1 %v4008_v4  ;;  %vm1918_vm14 = vcmp.eq.s32.totalorder %v1917_v45, 1  ;;  %v3353_v45 = vld [vmem:[#allocation10 + $0x84] ss:$16 sps:$4 sm:$0xff]  }
 0x473   :  { %2124 = vmatprep.subr.bf16.mxu0 %v4016_v0  ;;  %2165 = vmatprep.subr.bf16.mxu1 %v4020_v6 }
 0x474   :  { %2154 = vmatprep.mubr.bf16.mxu0 %v4308_v51  ;;  %2195 = vmatprep.mubr.bf16.mxu1 %v4308_v51 }
 0x476   :  { %2125 = vmatpush1.bf16.msra.mxu0 %v4014_v2  ;;  %2166 = vmatpush1.bf16.msra.mxu1 %v4018_v5 }
 0x477   :  { %2126 = vmatprep.subr.bf16.mxu0 %v4022_v16  ;;  %2167 = vmatprep.subr.bf16.mxu1 %v4025_v60 }
 0x47a   :  { %2127 = vmatpush1.bf16.msra.mxu0 %v4030_v57  ;;  %2168 = vmatpush1.bf16.msra.mxu1 %v4032_v38 }
 0x47b   :  { %2128 = vmatprep.subr.bf16.mxu0 %v4036_v9  ;;  %2169 = vmatprep.subr.bf16.mxu1 %v4038_v56 }
 0x47e   :  { %2129 = vmatpush1.bf16.msra.mxu0 %v4042_v58  ;;  %2170 = vmatpush1.bf16.msra.mxu1 %v4044_v44 }
 0x47f   :  { %2130 = vmatprep.subr.bf16.mxu0 %v4050_v55  ;;  %2171 = vmatprep.subr.bf16.mxu1 %v4052_v19 }
 0x482   :  { %2131 = vmatpush1.bf16.msra.mxu0 %v4054_v61  ;;  %2172 = vmatpush1.bf16.msra.mxu1 %v4056_v8 }
 0x483   :  { %2132 = vmatprep.subr.bf16.mxu0 %v4062_v10  ;;  %2173 = vmatprep.subr.bf16.mxu1 %v4064_v12 }
 0x486   :  { %2133 = vmatpush1.bf16.msra.mxu0 %v4066_v13  ;;  %2174 = vmatpush1.bf16.msra.mxu1 %v4068_v14 }
 0x487   :  { %2134 = vmatprep.subr.bf16.mxu0 %v4074_v15  ;;  %2175 = vmatprep.subr.bf16.mxu1 %v4076_v18 }
 0x48a   :  { %2135 = vmatpush1.bf16.msra.mxu0 %v4078_v20  ;;  %2176 = vmatpush1.bf16.msra.mxu1 %v4080_v21 }
 0x48b   :  { %2136 = vmatprep.subr.bf16.mxu0 %v4086_v22  ;;  %2177 = vmatprep.subr.bf16.mxu1 %v4088_v23 }
 0x48e   :  { %2137 = vmatpush1.bf16.msra.mxu0 %v4090_v24  ;;  %2178 = vmatpush1.bf16.msra.mxu1 %v4092_v25 }
 0x48f   :  { %2443 = vmatprep.subr.bf16.mxu0 %v4002_v3  ;;  %2484 = vmatprep.subr.bf16.mxu1 %v4004_v62 }
 0x544   :  { %v1835_v63 = vpop.f32.mrb[32].mxu0  ;;  %v1876_v32 = vpop.f32.mrb[32].mxu1 }
 0x545   :  { %v1883_v47 = vadd.f32 %v1835_v63, %v4313_v46  ;;  %v1885_v39 = vadd.f32 %v1876_v32, %v4314_v49  ;;  %v1837_v48 = vpop.f32.mrb[33].mxu0  ;;  %v1878_v52 = vpop.f32.mrb[33].mxu1 }
 0x546   :  { %v1884_v54 = vadd.f32 %v1837_v48, %v4315_v50  ;;  %v1886_v17 = vadd.f32 %v1878_v52, %v4316_v11  ;;  %v1839_v27 = vpop.f32.mrb[34].mxu0  ;;  %v1880_v53 = vpop.f32.mrb[34].mxu1 }
 0x547   :  { %v3095_v59 = vmul.f32 -1.442695, %v1883_v47  ;;  %v1840_v31 = vpop.f32.mrb[35].mxu0  ;;  %v1881_v28 = vpop.f32.mrb[35].mxu1 }
 0x548   :  { %v3096_v3 = vmul.f32 -1.442695, %v1884_v54  ;;  %v3097_v62 = vmul.f32 -1.442695, %v1886_v17  ;;  %v3329_v31 = vld [vmem:[#allocation10 + $0x4] ss:$16 sps:$4 sm:$0xff]  }
 0x549   :  { %3439 = vpow2.f32 %v3095_v59  ;;  %v3332_v28 = vld [vmem:[#allocation10 + $0xc] ss:$16 sps:$4 sm:$0xff]  }
 0x54a   :  { %3441 = vpow2.f32 %v3096_v3  ;;  %v3327_v3 = vld [vmem:[#allocation10] ss:$16 sps:$4 sm:$0xff]  }
 0x54b   :  { %3443 = vpow2.f32 %v3097_v62  ;;  %v3330_v62 = vld [vmem:[#allocation10 + $0x8] ss:$16 sps:$4 sm:$0xff]  }
 0x54c   :  { %3445 = vtanh.f32 %v1885_v39 }
 0x553   :  { %v3440_v29 = vpop.eup %3439 }
 0x554   :  { %v3442_v30 = vpop.eup %3441  ;;  %v1890_v33 = vadd.f32 1.0, %v3440_v29  ;;  %v3335_v29 = vld [vmem:[#allocation10 + $0x24] ss:$16 sps:$4 sm:$0xff]  }
 0x555   :  { %v1896_v34 = vadd.f32 1.0, %v3442_v30  ;;  %v3444_v26 = vpop.eup %3443  ;;  %v3338_v30 = vld [vmem:[#allocation10 + $0x2c] ss:$16 sps:$4 sm:$0xff]  }
 0x556   :  { %3447 = vrcp.f32 %v1890_v33  ;;  %v3446_v7 = vpop.eup %3445  ;;  %v1903_v41 = vadd.f32 1.0, %v3444_v26  ;;  %v3333_v33 = vld [vmem:[#allocation10 + $0x20] ss:$16 sps:$4 sm:$0xff]   ;;  %v3341_v26 = vld [vmem:[#allocation10 + $0x44] ss:$16 sps:$4 sm:$0xff]  }
 0x557   :  { %3449 = vrcp.f32 %v1896_v34  ;;  %v3336_v34 = vld [vmem:[#allocation10 + $0x28] ss:$16 sps:$4 sm:$0xff]  }
 0x558   :  { %3451 = vrcp.f32 %v1903_v41  ;;  %v3345_v41 = vld [vmem:[#allocation10 + $0x60] ss:$16 sps:$4 sm:$0xff]  }
 0x560   :  { %v3448_v35 = vpop.eup %3447 }
 0x561   :  { %v3450_v37 = vpop.eup %3449  ;;  %v1907_v40 = vmul.f32 %v3448_v35, %v3446_v7  ;;  %v3344_v7 = vld [vmem:[#allocation10 + $0x4c] ss:$16 sps:$4 sm:$0xff]   ;;  %v3339_v35 = vld [vmem:[#allocation10 + $0x40] ss:$16 sps:$4 sm:$0xff]  }
 0x562   :  { %v1906_v43 = vmul.f32 %v3450_v37, %v4153_v36  ;;  %v3452_v46 = vpop.eup %3451  ;;  %v3347_v37 = vld [vmem:[#allocation10 + $0x64] ss:$16 sps:$4 sm:$0xff]  }
 0x564   :  { %v1908_v63 = vadd.f32 %v1907_v40, %v1906_v43  ;;  %v3350_v40 = vld [vmem:[#allocation10 + $0x6c] ss:$16 sps:$4 sm:$0xff]   ;;  %v3348_v43 = vld [vmem:[#allocation10 + $0x68] ss:$16 sps:$4 sm:$0xff]  }
 0x566   :  { %3453 = vtanh.f32 %v1908_v63  ;;  %v4200_v32 = vsel %vm1918_vm14, %v1908_v63, %v4153_v36  ;;  %v2238_v36 = vpop.permute.xlu1 %2237  ;;  %v3356_v63 = vld [vmem:[#allocation10 + $0x8c] ss:$16 sps:$4 sm:$0xff]  }
 0x567   :  { %vm2239_vm15 = vcmp.eq.s32.totalorder %v2238_v36, 1 }
 0x570   :  { %v3454_v47 = vpop.eup %3453 }
 0x571   :  { %v1910_v49 = vmul.f32 %v3454_v47, %v3452_v46  ;;  %v3354_v46 = vld [vmem:[#allocation10 + $0x88] ss:$16 sps:$4 sm:$0xff]   ;;  %v3359_v47 = vld [vmem:[#allocation10 + $0xa4] ss:$16 sps:$4 sm:$0xff]  }
 0x573   :  { %v4203_v39 = vsel %vm1918_vm14, %v1910_v49, %v4156_v42  ;;  %v1921_v48 = vsel %vm1918_vm14, %v1910_v49, 0.0  ;;  %v3362_v49 = vld [vmem:[#allocation10 + $0xac] ss:$16 sps:$4 sm:$0xff]  }
 0x574   :  { %1923 = vst [vmem:[#allocation11 + $0x20] sm:$0xff] %v1921_v48  ;;  %v1929_v52 = vpack.c.bf16 %v4203_v39, %v4203_v39  ;;  %v3360_v48 = vld [vmem:[#allocation10 + $0xa8] ss:$16 sps:$4 sm:$0xff]  }
 0x576   :  { %2155 = vmatmul.mubr.bf16.vlgmr.msra.gmra.mrb[36].mxu0 %v1929_v52  ;;  %2196 = vmatmul.mubr.bf16.vlgmr.msra.gmra.mrb[36].mxu1 %v1929_v52  ;;  %v3365_v52 = vld [vmem:[#allocation10 + $0xc4] ss:$16 sps:$4 sm:$0xff]  }
 0x577   :  { %2444 = vmatpush1.bf16.msra.mxu0 %v4006_v1  ;;  %2485 = vmatpush1.bf16.msra.mxu1 %v4008_v4 }
 0x578   :  { %2445 = vmatprep.subr.bf16.mxu0 %v4016_v0  ;;  %2486 = vmatprep.subr.bf16.mxu1 %v4020_v6 }
 0x579   :  { %2475 = vmatprep.mubr.bf16.mxu0 %v4308_v51  ;;  %2516 = vmatprep.mubr.bf16.mxu1 %v4308_v51 }
 0x57b   :  { %2446 = vmatpush1.bf16.msra.mxu0 %v4014_v2  ;;  %2487 = vmatpush1.bf16.msra.mxu1 %v4018_v5  ;;  %v4317_v2 = vld [vmem:[#allocation23_spill] sm:$0xff]  ;;  %v4318_v5 = vld [vmem:[#allocation24_spill] sm:$0xff] }
 0x57c   :  { %2447 = vmatprep.subr.bf16.mxu0 %v4022_v16  ;;  %2488 = vmatprep.subr.bf16.mxu1 %v4025_v60 }
 0x57f   :  { %2448 = vmatpush1.bf16.msra.mxu0 %v4030_v57  ;;  %2489 = vmatpush1.bf16.msra.mxu1 %v4032_v38  ;;  %v4319_v57 = vld [vmem:[#allocation25_spill] sm:$0xff] }
 0x580   :  { %2449 = vmatprep.subr.bf16.mxu0 %v4036_v9  ;;  %2490 = vmatprep.subr.bf16.mxu1 %v4038_v56  ;;  %v4320_v9 = vld [vmem:[#allocation26_spill] sm:$0xff] }
 0x583   :  { %2450 = vmatpush1.bf16.msra.mxu0 %v4042_v58  ;;  %2491 = vmatpush1.bf16.msra.mxu1 %v4044_v44 }
 0x584   :  { %2451 = vmatprep.subr.bf16.mxu0 %v4050_v55  ;;  %2492 = vmatprep.subr.bf16.mxu1 %v4052_v19 }
 0x587   :  { %2452 = vmatpush1.bf16.msra.mxu0 %v4054_v61  ;;  %2493 = vmatpush1.bf16.msra.mxu1 %v4056_v8 }
 0x588   :  { %2453 = vmatprep.subr.bf16.mxu0 %v4062_v10  ;;  %2494 = vmatprep.subr.bf16.mxu1 %v4064_v12 }
 0x58b   :  { %2454 = vmatpush1.bf16.msra.mxu0 %v4066_v13  ;;  %2495 = vmatpush1.bf16.msra.mxu1 %v4068_v14 }
 0x58c   :  { %2455 = vmatprep.subr.bf16.mxu0 %v4074_v15  ;;  %2496 = vmatprep.subr.bf16.mxu1 %v4076_v18 }
 0x58f   :  { %2456 = vmatpush1.bf16.msra.mxu0 %v4078_v20  ;;  %2497 = vmatpush1.bf16.msra.mxu1 %v4080_v21 }
 0x590   :  { %2457 = vmatprep.subr.bf16.mxu0 %v4086_v22  ;;  %2498 = vmatprep.subr.bf16.mxu1 %v4088_v23 }
 0x593   :  { %2458 = vmatpush1.bf16.msra.mxu0 %v4090_v24  ;;  %2499 = vmatpush1.bf16.msra.mxu1 %v4092_v25 }
 0x594   :  { %2764 = vmatprep.subr.bf16.mxu0 %v3329_v31  ;;  %2805 = vmatprep.subr.bf16.mxu1 %v3332_v28 }
 0x649   :  { %v2156_v1 = vpop.f32.mrb[36].mxu0  ;;  %v2197_v4 = vpop.f32.mrb[36].mxu1 }
 0x64a   :  { %v2204_v0 = vadd.f32 %v2156_v1, %v4317_v2  ;;  %v2206_v6 = vadd.f32 %v2197_v4, %v4318_v5  ;;  %v2158_v16 = vpop.f32.mrb[37].mxu0  ;;  %v2199_v60 = vpop.f32.mrb[37].mxu1  ;;  %v3368_v1 = vld [vmem:[#allocation10 + $0xcc] ss:$16 sps:$4 sm:$0xff]   ;;  %v3363_v4 = vld [vmem:[#allocation10 + $0xc0] ss:$16 sps:$4 sm:$0xff]  }
 0x64b   :  { %v2205_v38 = vadd.f32 %v2158_v16, %v4319_v57  ;;  %v2207_v56 = vadd.f32 %v2199_v60, %v4320_v9  ;;  %v2160_v58 = vpop.f32.mrb[38].mxu0  ;;  %v2201_v44 = vpop.f32.mrb[38].mxu1  ;;  %v3366_v2 = vld [vmem:[#allocation10 + $0xc8] ss:$16 sps:$4 sm:$0xff]   ;;  %v3374_v5 = vld [vmem:[#allocation10 + $0xec] ss:$16 sps:$4 sm:$0xff]  }
 0x64c   :  { %v3131_v55 = vmul.f32 -1.442695, %v2204_v0  ;;  %v2161_v19 = vpop.f32.mrb[39].mxu0  ;;  %v2202_v61 = vpop.f32.mrb[39].mxu1  ;;  %v3371_v0 = vld [vmem:[#allocation10 + $0xe4] ss:$16 sps:$4 sm:$0xff]  }
 0x64d   :  { %v3132_v8 = vmul.f32 -1.442695, %v2205_v38  ;;  %v3133_v10 = vmul.f32 -1.442695, %v2207_v56  ;;  %v3372_v16 = vld [vmem:[#allocation10 + $0xe8] ss:$16 sps:$4 sm:$0xff]  }
 0x64e   :  { %3455 = vpow2.f32 %v3131_v55  ;;  %v4321_v38 = vld [vmem:[#allocation27_spill] sm:$0xff]  ;;  %v4322_v56 = vld [vmem:[#allocation28_spill] sm:$0xff]  ;;  %v4323_v19 = vld [vmem:[#allocation29_spill] sm:$0xff] }
 0x64f   :  { %3457 = vpow2.f32 %v3132_v8  ;;  %v4324_v8 = vld [vmem:[#allocation30_spill] sm:$0xff] }
 0x650   :  { %3459 = vpow2.f32 %v3133_v10 }
 0x651   :  { %3461 = vtanh.f32 %v2206_v6  ;;  %v3369_v6 = vld [vmem:[#allocation10 + $0xe0] ss:$16 sps:$4 sm:$0xff]  }
 0x658   :  { %v3456_v12 = vpop.eup %3455 }
 0x659   :  { %v3458_v13 = vpop.eup %3457  ;;  %v2211_v14 = vadd.f32 1.0, %v3456_v12 }
 0x65a   :  { %v2217_v15 = vadd.f32 1.0, %v3458_v13  ;;  %v3460_v18 = vpop.eup %3459 }
 0x65b   :  { %3463 = vrcp.f32 %v2211_v14  ;;  %v3462_v20 = vpop.eup %3461  ;;  %v2224_v24 = vadd.f32 1.0, %v3460_v18 }
 0x65c   :  { %3465 = vrcp.f32 %v2217_v15 }
 0x65d   :  { %3467 = vrcp.f32 %v2224_v24 }
 0x665   :  { %v3464_v21 = vpop.eup %3463 }
 0x666   :  { %v3466_v22 = vpop.eup %3465  ;;  %v2228_v23 = vmul.f32 %v3464_v21, %v3462_v20 }
 0x667   :  { %v2227_v25 = vmul.f32 %v3466_v22, %v4200_v32  ;;  %v3468_v54 = vpop.eup %3467 }
 0x669   :  { %v2229_v42 = vadd.f32 %v2228_v23, %v2227_v25 }
 0x66b   :  { %3469 = vtanh.f32 %v2229_v42  ;;  %v4245_v50 = vsel %vm2239_vm15, %v2229_v42, %v4200_v32  ;;  %v3351_v32 = vld [vmem:[#allocation10 + $0x80] ss:$16 sps:$4 sm:$0xff]  }
 0x675   :  { %v3470_v11 = vpop.eup %3469 }
 0x676   :  { %v2231_v17 = vmul.f32 %v3470_v11, %v3468_v54 }
 0x678   :  { %v4248_v27 = vsel %vm2239_vm15, %v2231_v17, %v4203_v39  ;;  %v2242_v53 = vsel %vm2239_vm15, %v2231_v17, 0.0  ;;  %v3357_v39 = vld [vmem:[#allocation10 + $0xa0] ss:$16 sps:$4 sm:$0xff]  }
 0x679   :  { %2244 = vst [vmem:[#allocation11 + $0x28] sm:$0xff] %v2242_v53  ;;  %v2250_v59 = vpack.c.bf16 %v4248_v27, %v4248_v27 }
 0x67b   :  { %2476 = vmatmul.mubr.bf16.vlgmr.msra.gmra.mrb[40].mxu0 %v2250_v59  ;;  %2517 = vmatmul.mubr.bf16.vlgmr.msra.gmra.mrb[40].mxu1 %v2250_v59  ;;  %v2559_v59 = vpop.permute.xlu0 %2558 }
 0x67c   :  { %2796 = vmatprep.mubr.bf16.mxu0 %v4308_v51  ;;  %2837 = vmatprep.mubr.bf16.mxu1 %v4308_v51  ;;  %v3342_v51 = vld [vmem:[#allocation10 + $0x48] ss:$16 sps:$4 sm:$0xff]   ;;  %vm2560_vm0 = vcmp.eq.s32.totalorder %v2559_v59, 1 }
 0x67d   :  { %2765 = vmatpush1.bf16.msra.mxu0 %v3327_v3  ;;  %2806 = vmatpush1.bf16.msra.mxu1 %v3330_v62 }
 0x67e   :  { %2766 = vmatprep.subr.bf16.mxu0 %v3335_v29  ;;  %2807 = vmatprep.subr.bf16.mxu1 %v3338_v30 }
 0x681   :  { %2767 = vmatpush1.bf16.msra.mxu0 %v3333_v33  ;;  %2808 = vmatpush1.bf16.msra.mxu1 %v3336_v34 }
 0x682   :  { %2768 = vmatprep.subr.bf16.mxu0 %v3341_v26  ;;  %2809 = vmatprep.subr.bf16.mxu1 %v3344_v7 }
 0x685   :  { %2769 = vmatpush1.bf16.msra.mxu0 %v3339_v35  ;;  %2810 = vmatpush1.bf16.msra.mxu1 %v3342_v51  ;;  %v4325_v51 = vld [vmem:[#allocation31_spill] sm:$0xff] }
 0x686   :  { %2770 = vmatprep.subr.bf16.mxu0 %v3347_v37  ;;  %2811 = vmatprep.subr.bf16.mxu1 %v3350_v40  ;;  %v4326_v40 = vld [vmem:[#allocation32_spill] sm:$0xff] }
 0x689   :  { %2771 = vmatpush1.bf16.msra.mxu0 %v3345_v41  ;;  %2812 = vmatpush1.bf16.msra.mxu1 %v3348_v43 }
 0x68a   :  { %2772 = vmatprep.subr.bf16.mxu0 %v3353_v45  ;;  %2813 = vmatprep.subr.bf16.mxu1 %v3356_v63  ;;  %v4327_v63 = vld [vmem:[#allocation33_spill] sm:$0xff] }
 0x68d   :  { %2773 = vmatpush1.bf16.msra.mxu0 %v3351_v32  ;;  %2814 = vmatpush1.bf16.msra.mxu1 %v3354_v46  ;;  %v4328_v32 = vld [vmem:[#allocation34_spill] sm:$0xff] }
 0x68e   :  { %2774 = vmatprep.subr.bf16.mxu0 %v3359_v47  ;;  %2815 = vmatprep.subr.bf16.mxu1 %v3362_v49 }
 0x691   :  { %2775 = vmatpush1.bf16.msra.mxu0 %v3357_v39  ;;  %2816 = vmatpush1.bf16.msra.mxu1 %v3360_v48 }
 0x692   :  { %2776 = vmatprep.subr.bf16.mxu0 %v3365_v52  ;;  %2817 = vmatprep.subr.bf16.mxu1 %v3368_v1 }
 0x695   :  { %2777 = vmatpush1.bf16.msra.mxu0 %v3363_v4  ;;  %2818 = vmatpush1.bf16.msra.mxu1 %v3366_v2 }
 0x696   :  { %2778 = vmatprep.subr.bf16.mxu0 %v3371_v0  ;;  %2819 = vmatprep.subr.bf16.mxu1 %v3374_v5 }
 0x699   :  { %2779 = vmatpush1.bf16.msra.mxu0 %v3369_v6  ;;  %2820 = vmatpush1.bf16.msra.mxu1 %v3372_v16 }
 0x74e   :  { %v2477_v60 = vpop.f32.mrb[40].mxu0  ;;  %v2518_v57 = vpop.f32.mrb[40].mxu1 }
 0x74f   :  { %v2525_v9 = vadd.f32 %v2477_v60, %v4321_v38  ;;  %v2527_v58 = vadd.f32 %v2518_v57, %v4322_v56  ;;  %v2479_v44 = vpop.f32.mrb[41].mxu0  ;;  %v2520_v55 = vpop.f32.mrb[41].mxu1 }
 0x750   :  { %v2526_v61 = vadd.f32 %v2479_v44, %v4323_v19  ;;  %v2528_v10 = vadd.f32 %v2520_v55, %v4324_v8  ;;  %v2481_v12 = vpop.f32.mrb[42].mxu0  ;;  %v2522_v13 = vpop.f32.mrb[42].mxu1 }
 0x751   :  { %v3167_v14 = vmul.f32 -1.442695, %v2525_v9  ;;  %v2482_v15 = vpop.f32.mrb[43].mxu0  ;;  %v2523_v18 = vpop.f32.mrb[43].mxu1 }
 0x752   :  { %v3168_v20 = vmul.f32 -1.442695, %v2526_v61  ;;  %v3169_v21 = vmul.f32 -1.442695, %v2528_v10  ;;  %v2880_v55 = vpop.permute.xlu1 %2879 }
 0x753   :  { %3471 = vpow2.f32 %v3167_v14  ;;  %vm2881_vm1 = vcmp.eq.s32.totalorder %v2880_v55, 1 }
 0x754   :  { %3473 = vpow2.f32 %v3168_v20 }
 0x755   :  { %3475 = vpow2.f32 %v3169_v21 }
 0x756   :  { %3477 = vtanh.f32 %v2527_v58 }
 0x75d   :  { %v3472_v22 = vpop.eup %3471 }
 0x75e   :  { %v3474_v23 = vpop.eup %3473  ;;  %v2532_v24 = vadd.f32 1.0, %v3472_v22 }
 0x75f   :  { %v2538_v25 = vadd.f32 1.0, %v3474_v23  ;;  %v3476_v36 = vpop.eup %3475 }
 0x760   :  { %3479 = vrcp.f32 %v2532_v24  ;;  %v3478_v42 = vpop.eup %3477  ;;  %v2545_v53 = vadd.f32 1.0, %v3476_v36 }
 0x761   :  { %3481 = vrcp.f32 %v2538_v25 }
 0x762   :  { %3483 = vrcp.f32 %v2545_v53 }
 0x76a   :  { %v3480_v54 = vpop.eup %3479 }
 0x76b   :  { %v3482_v11 = vpop.eup %3481  ;;  %v2549_v17 = vmul.f32 %v3480_v54, %v3478_v42 }
 0x76c   :  { %v2548_v31 = vmul.f32 %v3482_v11, %v4245_v50  ;;  %v3484_v62 = vpop.eup %3483 }
 0x76e   :  { %v2550_v28 = vadd.f32 %v2549_v17, %v2548_v31 }
 0x770   :  { %3485 = vtanh.f32 %v2550_v28  ;;  %v2561_v3 = vsel %vm2560_vm0, %v2550_v28, %v4245_v50 }
 0x77a   :  { %v3486_v29 = vpop.eup %3485 }
 0x77b   :  { %v2552_v30 = vmul.f32 %v3486_v29, %v3484_v62 }
 0x77d   :  { %v2562_v33 = vsel %vm2560_vm0, %v2552_v30, %v4248_v27  ;;  %v2563_v34 = vsel %vm2560_vm0, %v2552_v30, 0.0 }
 0x77e   :  { %2565 = vst [vmem:[#allocation11 + $0x30] sm:$0xff] %v2563_v34  ;;  %v2571_v26 = vpack.c.bf16 %v2562_v33, %v2562_v33 }
 0x780   :  { %2797 = vmatmul.mubr.bf16.vlgmr.msra.gmra.mrb[44].mxu0 %v2571_v26  ;;  %2838 = vmatmul.mubr.bf16.vlgmr.msra.gmra.mrb[44].mxu1 %v2571_v26 }
 0x853   :  { %v2798_v7 = vpop.f32.mrb[44].mxu0  ;;  %v2839_v35 = vpop.f32.mrb[44].mxu1 }
 0x854   :  { %v2846_v37 = vadd.f32 %v2798_v7, %v4325_v51  ;;  %v2848_v41 = vadd.f32 %v2839_v35, %v4326_v40  ;;  %v2800_v43 = vpop.f32.mrb[45].mxu0  ;;  %v2841_v45 = vpop.f32.mrb[45].mxu1 }
 0x855   :  { %v2847_v50 = vadd.f32 %v2800_v43, %v4327_v63  ;;  %v2849_v46 = vadd.f32 %v2841_v45, %v4328_v32  ;;  %v2802_v47 = vpop.f32.mrb[46].mxu0  ;;  %v2843_v49 = vpop.f32.mrb[46].mxu1 }
 0x856   :  { %v3203_v27 = vmul.f32 -1.442695, %v2846_v37  ;;  %v2803_v39 = vpop.f32.mrb[47].mxu0  ;;  %v2844_v48 = vpop.f32.mrb[47].mxu1 }
 0x857   :  { %v3204_v52 = vmul.f32 -1.442695, %v2847_v50  ;;  %v3205_v1 = vmul.f32 -1.442695, %v2849_v46 }
 0x858   :  { %3487 = vpow2.f32 %v3203_v27 }
 0x859   :  { %3489 = vpow2.f32 %v3204_v52 }
 0x85a   :  { %3491 = vpow2.f32 %v3205_v1 }
 0x85b   :  { %3493 = vtanh.f32 %v2848_v41 }
 0x862   :  { %v3488_v4 = vpop.eup %3487 }
 0x863   :  { %v3490_v2 = vpop.eup %3489  ;;  %v2853_v0 = vadd.f32 1.0, %v3488_v4 }
 0x864   :  { %v2859_v5 = vadd.f32 1.0, %v3490_v2  ;;  %v3492_v6 = vpop.eup %3491 }
 0x865   :  { %3495 = vrcp.f32 %v2853_v0  ;;  %v3494_v16 = vpop.eup %3493  ;;  %v2866_v9 = vadd.f32 1.0, %v3492_v6 }
 0x866   :  { %3497 = vrcp.f32 %v2859_v5 }
 0x867   :  { %3499 = vrcp.f32 %v2866_v9 }
 0x86f   :  { %v3496_v60 = vpop.eup %3495 }
 0x870   :  { %v3498_v57 = vpop.eup %3497  ;;  %v2870_v38 = vmul.f32 %v3496_v60, %v3494_v16 }
 0x871   :  { %v2869_v56 = vmul.f32 %v3498_v57, %v2561_v3  ;;  %v3500_v44 = vpop.eup %3499 }
 0x873   :  { %v2871_v58 = vadd.f32 %v2870_v38, %v2869_v56 }
 0x875   :  { %3501 = vtanh.f32 %v2871_v58 }
 0x87f   :  { %v3502_v19 = vpop.eup %3501 }
 0x880   :  { %v2873_v61 = vmul.f32 %v3502_v19, %v3500_v44 }
 0x882   :  { %v2884_v8 = vsel %vm2881_vm1, %v2873_v61, 0.0 }
 0x883   :  { %2886 = vst [vmem:[#allocation11 + $0x38] sm:$0xff] %v2884_v8 }
 0x884   :  { %3580 = shalt.err (!%p3577_p0)
}
 0x885   :  { %s3581_s12 = scalar_lea.hbm %s4285_s5, 1024 }
 0x886   :  { %p3582_p1 = scmp.ne.s32.totalorder %s4285_s5, %s3581_s12  ;;  %p3585_p2 = scmp.lt.u32.totalorder %s3581_s12, %s4285_s5 }
 0x888   :  { %p3587_p3 = pnand %p3585_p2, %p3582_p1 }
 0x88a   :  { %3590 = shalt.err (!%p3587_p3)
}
 0x88b   :  { %2900 = dma.vmem_to_hbm [thread:$0]  %s2895_s8, 1024, %s4285_s5, [#allocation7], %s3601_s2, %s3601_s2, %s3602_s17  }
 0x88c   :  { %3595 = dma.done.wait [#allocation7], 1024  }
 0x88d   :  { %3596 = vsyncadd [#allocation7], 4294966272 }
 0x88e   :  { %2904 = vsyncpa [#allocation6], 1 }
 0x88f   :  { %2905 = vsyncpa [#allocation9], 1 }
 0x890   :  { %2906 = vsyncpa [#allocation7], 1 }

</bundles_post_ra>
